<compile_context>
chip_gen: v7x
topology: tpu7x:2x2x1
jax: 0.10.0
libtpu: 0.0.40
codegen_flags: <defaults>
</compile_context>

<pallas_src>
import functools
import inspect
import math

import jax
import jax.numpy as jnp
import numpy as np
from jax.experimental import pallas as pl
from jax.experimental.pallas import tpu as pltpu


# --------------------------- small shared helpers --------------------------- #
def _rotate_half(t, dh, dh2):
  # Lane-aligned head_dim -> single XLU rotate (separate VLIW slot from the VPU
  # muls/adds of RoPE). For narrow head dims fall back to slice+concat so the
  # kernel still lowers everywhere.
  if dh % 128 == 0:
    return pltpu.roll(t, dh2, axis=1)
  return jnp.concatenate([t[:, dh2:], t[:, :dh2]], axis=1)


def _layer_norm(v, eps):  # FP32LayerNorm, no affine
  m = jnp.mean(v, axis=-1, keepdims=True)
  var = jnp.mean((v - m) ** 2, axis=-1, keepdims=True)
  return (v - m) * jax.lax.rsqrt(var + eps)


def _rms_norm(v, g, eps):  # rms_norm_across_heads (over full D)
  return v * jax.lax.rsqrt(jnp.mean(v * v, axis=-1, keepdims=True) + eps) * g


# ------------------------- kernel 1: K / V precompute ----------------------- #
def kv_kernel(x_ref, mod_ref, cos_ref, sin_ref,
              wk_ref, bk_ref, wv_ref, bv_ref, gk_ref,
              kT_ref, v_ref,
              *, num_heads, head_dim, eps):
  H, dh = num_heads, head_dim
  dh2 = dh // 2
  f32, bf16 = jnp.float32, jnp.bfloat16

  mod = mod_ref[0].astype(f32)                 # (6, D)
  shift_msa, scale_msa = mod[0:1], mod[1:2]

  xf = x_ref[0].astype(f32)                    # (kv_tile, D)
  n1 = _layer_norm(xf, eps) * (1.0 + scale_msa) + shift_msa
  n1b = n1.astype(bf16)

  k = jnp.dot(n1b, wk_ref[...], preferred_element_type=f32) + bk_ref[...]
  v = jnp.dot(n1b, wv_ref[...], preferred_element_type=f32) + bv_ref[...]
  k = _rms_norm(k, gk_ref[...], eps)

  cos, sin = cos_ref[...], sin_ref[...]        # (kv_tile, dh)
  for h in range(H):                           # static unroll (H is small)
    sl = slice(h * dh, (h + 1) * dh)
    kh = k[:, sl]
    kh = kh * cos + _rotate_half(kh, dh, dh2) * sin
    # One transpose per (batch, kv_tile, head) total; K is stored lane-dense
    # along S so the attention kernel never transposes.
    kT_ref[0, h] = kh.T.astype(bf16)           # (dh, kv_tile)
    v_ref[0, h] = v[:, sl].astype(bf16)        # (kv_tile, dh)


# ---------------------- kernel 2: attention + FFN per q-tile ----------------- #
def attn_ffn_kernel(x_ref, mod_ref, cos_ref, sin_ref, kT_ref, v_ref,
                    wq_ref, bq_ref, gq_ref, wo_ref, bo_ref,
                    w1_ref, b1_ref, w2_ref, b2_ref,
                    out_ref, o_scr,
                    *, num_heads, head_dim, f_chunk, eps):
  H, dh = num_heads, head_dim
  dh2 = dh // 2
  f32, bf16 = jnp.float32, jnp.bfloat16
  tq = x_ref.shape[1]
  D = x_ref.shape[2]

  mod = mod_ref[0].astype(f32)                 # (6, D)
  shift_msa, scale_msa, gate_msa = mod[0:1], mod[1:2], mod[2:3]
  c_shift, c_scale, c_gate = mod[3:4], mod[4:5], mod[5:6]

  # ---- query path --------------------------------------------------------- #
  xq = x_ref[0].astype(f32)                    # (tq, D)
  n1 = _layer_norm(xq, eps) * (1.0 + scale_msa) + shift_msa
  q = jnp.dot(n1.astype(bf16), wq_ref[...], preferred_element_type=f32) + bq_ref[...]
  q = _rms_norm(q, gq_ref[...], eps) * (1.0 / math.sqrt(dh))  # fold softmax scale

  cos, sin = cos_ref[...], sin_ref[...]        # (tq, dh)
  for h in range(H):                           # static unroll (H is small)
    sl = slice(h * dh, (h + 1) * dh)
    qh = q[:, sl]
    qh = (qh * cos + _rotate_half(qh, dh, dh2) * sin).astype(bf16)
    s = jnp.dot(qh, kT_ref[0, h], preferred_element_type=f32)   # (tq, S)
    s = s - jnp.max(s, axis=-1, keepdims=True)
    p = jnp.exp(s)
    p = p * pl.reciprocal(jnp.sum(p, axis=-1, keepdims=True), approx=True)
    o_scr[:, sl] = jnp.dot(p.astype(bf16), v_ref[0, h],
                           preferred_element_type=f32).astype(bf16)

  # single K=D out-projection over the assembled (bf16) heads
  attn = jnp.dot(o_scr[...], wo_ref[...], preferred_element_type=f32) + bo_ref[...]
  # TODO(synk): attn.to_out[1] is nn.Dropout(p=0.0) -> identity at inference.

  x1 = xq + attn * gate_msa                    # fp32 residual

  # ---- FFN (chunked over F to bound the fp32 h1 intermediate) ------------- #
  n2 = _layer_norm(x1, eps) * (1.0 + c_scale) + c_shift
  n2b = n2.astype(bf16)
  F = w1_ref.shape[1]
  ff = jnp.zeros((tq, D), f32)
  for c0 in range(0, F, f_chunk):              # static chunk loop
    cs = slice(c0, c0 + f_chunk)
    h1 = jnp.dot(n2b, w1_ref[:, cs], preferred_element_type=f32) + b1_ref[:, cs]
    # gelu-approximate (tanh), fp32 for accuracy
    h1 = 0.5 * h1 * (1.0 + jnp.tanh(0.7978845608028654 *
                                    (h1 + 0.044715 * h1 * h1 * h1)))
    ff = ff + jnp.dot(h1.astype(bf16), w2_ref[cs, :], preferred_element_type=f32)
  ff = ff + b2_ref[...]

  out_ref[0] = (x1 + ff * c_gate).astype(out_ref.dtype)


# --------------------------------- wrapper ---------------------------------- #
def _supports_buffered():
  if not hasattr(pl, "Buffered"):
    return False
  try:
    sig = inspect.signature(pl.BlockSpec)
  except (TypeError, ValueError):
    return True
  return "pipeline_mode" in sig.parameters


def _vmem_limit_bytes():
  # Per-generation budget: ~80% of physical VMEM, capped at 112 MiB.
  cap = 64 * 1024 * 1024                       # conservative fallback (v7x-sized)
  if hasattr(pltpu, "get_tpu_info"):
    try:                                       # hardware query only; never masks
      cap = pltpu.get_tpu_info().vmem_capacity_bytes   # compile errors
    except Exception:
      pass
  return min(int(cap * 0.8), 112 * 1024 * 1024)


def transformer_block(x, temb, cos, sin, params, *, num_heads, eps=1e-6,
                      q_tile=None, kv_tile=None, f_chunk=None):
  B, S, D = x.shape
  H = num_heads
  dh = D // H
  dh2 = dh // 2
  F = params["w1"].shape[1]
  f32, bf16 = jnp.float32, jnp.bfloat16

  if q_tile is None:
    q_tile = S
    for cand in (512, 256, 128):
      if S % cand == 0:
        q_tile = cand
        break
  if kv_tile is None:
    kv_tile = S
    for cand in (512, 256, 128):
      if S % cand == 0 and S > cand:
        kv_tile = cand
        break
  if f_chunk is None:
    f_chunk = F
    for cand in (2048, 1024):
      if F % cand == 0 and F > cand:
        f_chunk = cand
        break

  assert D % H == 0 and dh % 2 == 0
  assert S % q_tile == 0 and q_tile % 16 == 0          # bf16 o_scr sublane packing
  assert S % kv_tile == 0 and kv_tile % 8 == 0
  assert kv_tile == S or kv_tile % 128 == 0            # lane-dense K^T writeback
  assert F % f_chunk == 0

  # De-interleave permutation (per head: even pair components, then odd ones),
  # applied once to the q/k projection columns + bias + rms gain so in-kernel
  # RoPE is a cheap half-rotation (roll) instead of a dense matmul.
  perm = np.concatenate([
      np.concatenate([np.arange(h * dh, (h + 1) * dh, 2),
                      np.arange(h * dh + 1, (h + 1) * dh, 2)])
      for h in range(H)])

  mod = params["scale_shift_table"].astype(f32) + temb.astype(f32)   # (B, 6, D)
  cos_h = jnp.concatenate([cos, cos], axis=-1).astype(f32)           # (S, dh)
  sin_h = jnp.concatenate([-sin, sin], axis=-1).astype(f32)          # (S, dh)

  row = lambda v: v.reshape(1, -1).astype(f32)
  wq = params["wq"][:, perm].astype(bf16)
  wk = params["wk"][:, perm].astype(bf16)
  wv = params["wv"].astype(bf16)
  wo = params["wo"].astype(bf16)
  w1 = params["w1"].astype(bf16)
  w2 = params["w2"].astype(bf16)
  bq, bk = row(params["bq"][perm]), row(params["bk"][perm])
  gq, gk = row(params["gq"][perm]), row(params["gk"][perm])
  bv, bo = row(params["bv"]), row(params["bo"])
  b1, b2 = row(params["b1"]), row(params["b2"])

  has_buffered = _supports_buffered()
  vmem_limit = _vmem_limit_bytes()

  def const_spec(shape):
    nd = len(shape)
    idx = lambda *_: (0,) * nd
    if has_buffered:
      # constant index -> a single VMEM copy of each weight is enough
      return pl.BlockSpec(shape, idx, pipeline_mode=pl.Buffered(1))
    return pl.BlockSpec(shape, idx)

  # ---- pass 1: K^T / V for the whole sequence (streamed in kv_tile chunks) --
  kv_k = functools.partial(kv_kernel, num_heads=H, head_dim=dh, eps=eps)
  kT, vh = pl.pallas_call(
      kv_k,
      out_shape=(jax.ShapeDtypeStruct((B, H, dh, S), bf16),
                 jax.ShapeDtypeStruct((B, H, S, dh), bf16)),
      grid=(B, S // kv_tile),
      in_specs=[
          pl.BlockSpec((1, kv_tile, D), lambda b, t: (b, t, 0)),  # x chunk
          pl.BlockSpec((1, 6, D), lambda b, t: (b, 0, 0)),        # mod
          pl.BlockSpec((kv_tile, dh), lambda b, t: (t, 0)),       # cos
          pl.BlockSpec((kv_tile, dh), lambda b, t: (t, 0)),       # sin
          const_spec((D, D)), const_spec((1, D)),                 # wk, bk
          const_spec((D, D)), const_spec((1, D)),                 # wv, bv
          const_spec((1, D)),                                     # gk
      ],
      out_specs=(pl.BlockSpec((1, H, dh, kv_tile), lambda b, t: (b, 0, 0, t)),
                 pl.BlockSpec((1, H, kv_tile, dh), lambda b, t: (b, 0, t, 0))),
      compiler_params=pltpu.CompilerParams(
          dimension_semantics=("parallel", "parallel"),
          vmem_limit_bytes=vmem_limit),
  )(x, mod, cos_h, sin_h, wk, bk, wv, bv, gk)

  # ---- pass 2: attention + FFN per query tile (fully parallel grid) ---------
  af_k = functools.partial(attn_ffn_kernel, num_heads=H, head_dim=dh,
                           f_chunk=f_chunk, eps=eps)
  out = pl.pallas_call(
      af_k,
      out_shape=jax.ShapeDtypeStruct((B, S, D), x.dtype),
      grid=(B, S // q_tile),
      in_specs=[
          pl.BlockSpec((1, q_tile, D), lambda b, t: (b, t, 0)),   # x (per tile)
          pl.BlockSpec((1, 6, D), lambda b, t: (b, 0, 0)),        # mod
          pl.BlockSpec((q_tile, dh), lambda b, t: (t, 0)),        # cos
          pl.BlockSpec((q_tile, dh), lambda b, t: (t, 0)),        # sin
          pl.BlockSpec((1, H, dh, S), lambda b, t: (b, 0, 0, 0)), # K^T (per batch)
          pl.BlockSpec((1, H, S, dh), lambda b, t: (b, 0, 0, 0)), # V   (per batch)
          const_spec((D, D)), const_spec((1, D)),                 # wq, bq
          const_spec((1, D)),                                     # gq
          const_spec((D, D)), const_spec((1, D)),                 # wo, bo
          const_spec((D, F)), const_spec((1, F)),                 # w1, b1
          const_spec((F, D)), const_spec((1, D)),                 # w2, b2
      ],
      out_specs=pl.BlockSpec((1, q_tile, D), lambda b, t: (b, t, 0)),
      scratch_shapes=[pltpu.VMEM((q_tile, D), bf16)],             # head assembly
      compiler_params=pltpu.CompilerParams(
          dimension_semantics=("parallel", "parallel"),
          vmem_limit_bytes=vmem_limit),
  )(x, mod, cos_h, sin_h, kT, vh, wq, bq, gq, wo, bo, w1, b1, w2, b2)
  return out


# ----------------------------- pure-JAX reference ---------------------------- #
def reference(x, temb, cos, sin, params, *, num_heads, eps=1e-6):
  B, S, D = x.shape
  H, dh = num_heads, D // num_heads
  dot = functools.partial(jnp.einsum, precision=jax.lax.Precision.HIGHEST)

  mod = params["scale_shift_table"] + temb
  (shift_msa, scale_msa, gate_msa,
   c_shift, c_scale, c_gate) = [mod[:, i:i + 1, :] for i in range(6)]

  def ln(v):
    m = jnp.mean(v, -1, keepdims=True)
    var = jnp.mean((v - m) ** 2, -1, keepdims=True)
    return (v - m) * jax.lax.rsqrt(var + eps)

  def rms(v, g):
    return v * jax.lax.rsqrt(jnp.mean(v * v, -1, keepdims=True) + eps) * g

  n1 = ln(x) * (1 + scale_msa) + shift_msa
  q = dot("bsd,de->bse", n1, params["wq"]) + params["bq"]
  k = dot("bsd,de->bse", n1, params["wk"]) + params["bk"]
  v = dot("bsd,de->bse", n1, params["wv"]) + params["bv"]
  q, k = rms(q, params["gq"]), rms(k, params["gk"])

  q = q.reshape(B, S, H, dh).transpose(0, 2, 1, 3)
  k = k.reshape(B, S, H, dh).transpose(0, 2, 1, 3)
  v = v.reshape(B, S, H, dh).transpose(0, 2, 1, 3)

  def rope(t):  # complex multiply on (even, odd) pairs of head_dim
    t0, t1 = t[..., 0::2], t[..., 1::2]
    c, s = cos[None, None], sin[None, None]
    return jnp.stack([t0 * c - t1 * s, t1 * c + t0 * s], -1).reshape(t.shape)

  q, k = rope(q), rope(k)
  scores = dot("bhqd,bhkd->bhqk", q, k) / math.sqrt(dh)
  p = jax.nn.softmax(scores, axis=-1)
  o = dot("bhqk,bhkd->bhqd", p, v).transpose(0, 2, 1, 3).reshape(B, S, D)
  attn = dot("bsd,de->bse", o, params["wo"]) + params["bo"]

  x1 = x + attn * gate_msa
  n2 = ln(x1) * (1 + c_scale) + c_shift
  h1 = dot("bsd,df->bsf", n2, params["w1"]) + params["b1"]
  h1 = 0.5 * h1 * (1 + jnp.tanh(math.sqrt(2 / math.pi) * (h1 + 0.044715 * h1 ** 3)))
  ff = dot("bsf,fd->bsd", h1, params["w2"]) + params["b2"]
  return x1 + ff * c_gate


# ------------------------------------ main ----------------------------------- #
if __name__ == "__main__":
  B, S, D = 2, 128, 256
  num_heads, ffn_dim = 2, 512
  head_dim = D // num_heads
  eps = 1e-6

  key = jax.random.PRNGKey(0)
  ks = jax.random.split(key, 16)
  wscale = 0.05

  params = {
      "scale_shift_table": jax.random.normal(ks[0], (1, 6, D), jnp.float32) / math.sqrt(D),
      "wq": jax.random.normal(ks[1], (D, D), jnp.float32) * wscale,
      "bq": jax.random.normal(ks[2], (D,), jnp.float32) * 0.01,
      "wk": jax.random.normal(ks[3], (D, D), jnp.float32) * wscale,
      "bk": jax.random.normal(ks[4], (D,), jnp.float32) * 0.01,
      "wv": jax.random.normal(ks[5], (D, D), jnp.float32) * wscale,
      "bv": jax.random.normal(ks[6], (D,), jnp.float32) * 0.01,
      "gq": 1.0 + 0.1 * jax.random.normal(ks[7], (D,), jnp.float32),
      "gk": 1.0 + 0.1 * jax.random.normal(ks[8], (D,), jnp.float32),
      "wo": jax.random.normal(ks[9], (D, D), jnp.float32) * wscale,
      "bo": jax.random.normal(ks[10], (D,), jnp.float32) * 0.01,
      "w1": jax.random.normal(ks[11], (D, ffn_dim), jnp.float32) * wscale,
      "b1": jax.random.normal(ks[12], (ffn_dim,), jnp.float32) * 0.01,
      "w2": jax.random.normal(ks[13], (ffn_dim, D), jnp.float32) * wscale,
      "b2": jax.random.normal(ks[14], (D,), jnp.float32) * 0.01,
  }

  dkey = jax.random.split(ks[15], 3)
  x = jax.random.normal(dkey[0], (B, S, D), jnp.float32)
  temb = jax.random.normal(dkey[1], (B, 6, D), jnp.float32) * 0.1

  # rotary tables (same role as the complex `rotary_emb` in PyTorch, applied in fp32)
  pos = jnp.arange(S, dtype=jnp.float32)[:, None]
  inv_freq = 1.0 / (10000.0 ** (jnp.arange(0, head_dim, 2, dtype=jnp.float32) / head_dim))
  angles = pos * inv_freq[None, :]          # (S, head_dim//2)
  cos, sin = jnp.cos(angles), jnp.sin(angles)

  out = transformer_block(x, temb, cos, sin, params,
                          num_heads=num_heads, eps=eps, q_tile=64)
  out = jax.block_until_ready(out)

  ref = reference(x, temb, cos, sin, params, num_heads=num_heads, eps=eps)
  np.testing.assert_allclose(np.asarray(out), np.asarray(ref), rtol=2e-2, atol=2e-2)

  print("KERNEL_OK")
</pallas_src>

<mosaic_0001>
module attributes {stable_mosaic.version = 11 : i64} {
  func.func @kv_kernel(%arg0: i32, %arg1: i32, %arg2: memref<1x128x256xf32, #tpu.memory_space<vmem>>, %arg3: memref<1x6x256xf32, #tpu.memory_space<vmem>>, %arg4: memref<128x128xf32, #tpu.memory_space<vmem>>, %arg5: memref<128x128xf32, #tpu.memory_space<vmem>>, %arg6: memref<256x256xbf16, #tpu.memory_space<vmem>>, %arg7: memref<1x256xf32, #tpu.memory_space<vmem>>, %arg8: memref<256x256xbf16, #tpu.memory_space<vmem>>, %arg9: memref<1x256xf32, #tpu.memory_space<vmem>>, %arg10: memref<1x256xf32, #tpu.memory_space<vmem>>, %arg11: memref<1x2x128x128xbf16, #tpu.memory_space<vmem>>, %arg12: memref<1x2x128x128xbf16, #tpu.memory_space<vmem>>) attributes {dimension_semantics = [#tpu.dimension_semantics<parallel>, #tpu.dimension_semantics<parallel>], iteration_bounds = array<i64: 2, 1>, scalar_prefetch = 0 : i64, scratch_operands = 0 : i64, tpu.core_type = #tpu.core_type<tc>, window_params = [{transform_indices = @transform_0, window_bounds = array<i64: 1, 128, 256>}, {transform_indices = @transform_1, window_bounds = array<i64: 1, 6, 256>}, {transform_indices = @transform_2, window_bounds = array<i64: 128, 128>}, {transform_indices = @transform_3, window_bounds = array<i64: 128, 128>}, {pipeline_mode = #tpu.pipeline_mode<synchronous>, transform_indices = @transform_4, window_bounds = array<i64: 256, 256>}, {pipeline_mode = #tpu.pipeline_mode<synchronous>, transform_indices = @transform_5, window_bounds = array<i64: 1, 256>}, {pipeline_mode = #tpu.pipeline_mode<synchronous>, transform_indices = @transform_6, window_bounds = array<i64: 256, 256>}, {pipeline_mode = #tpu.pipeline_mode<synchronous>, transform_indices = @transform_7, window_bounds = array<i64: 1, 256>}, {pipeline_mode = #tpu.pipeline_mode<synchronous>, transform_indices = @transform_8, window_bounds = array<i64: 1, 256>}, {transform_indices = @transform_9, window_bounds = array<i64: 1, 2, 128, 128>}, {transform_indices = @transform_10, window_bounds = array<i64: 1, 2, 128, 128>}]} {
    %c0 = arith.constant 0 : index
    %c0_0 = arith.constant 0 : index
    %c0_1 = arith.constant 0 : index
    %0 = vector.load %arg3[%c0, %c0_0, %c0_1] : memref<1x6x256xf32, #tpu.memory_space<vmem>>, vector<1x6x256xf32>
    %1 = vector.shape_cast %0 : vector<1x6x256xf32> to vector<6x256xf32>
    %2 = vector.extract_strided_slice %1 {offsets = [0, 0], sizes = [1, 256], strides = [1, 1]} : vector<6x256xf32> to vector<1x256xf32>
    %3 = vector.extract_strided_slice %1 {offsets = [1, 0], sizes = [1, 256], strides = [1, 1]} : vector<6x256xf32> to vector<1x256xf32>
    %c0_2 = arith.constant 0 : index
    %c0_3 = arith.constant 0 : index
    %c0_4 = arith.constant 0 : index
    %4 = vector.load %arg2[%c0_2, %c0_3, %c0_4] : memref<1x128x256xf32, #tpu.memory_space<vmem>>, vector<1x128x256xf32>
    %5 = vector.shape_cast %4 : vector<1x128x256xf32> to vector<128x256xf32>
    %cst = arith.constant dense<0.000000e+00> : vector<128xf32>
    %6 = vector.multi_reduction <add>, %5, %cst [1] : vector<128x256xf32> to vector<128xf32>
    %7 = vector.shape_cast %6 : vector<128xf32> to vector<128x1xf32>
    %cst_5 = arith.constant 2.560000e+02 : f32
    %8 = vector.broadcast %cst_5 : f32 to vector<128x1xf32>
    %9 = arith.divf %7, %8 : vector<128x1xf32>
    %10 = vector.broadcast %9 : vector<128x1xf32> to vector<128x256xf32>
    %11 = arith.subf %5, %10 : vector<128x256xf32>
    %12 = arith.mulf %11, %11 : vector<128x256xf32>
    %cst_6 = arith.constant dense<0.000000e+00> : vector<128xf32>
    %13 = vector.multi_reduction <add>, %12, %cst_6 [1] : vector<128x256xf32> to vector<128xf32>
    %14 = vector.shape_cast %13 : vector<128xf32> to vector<128x1xf32>
    %cst_7 = arith.constant 2.560000e+02 : f32
    %15 = vector.broadcast %cst_7 : f32 to vector<128x1xf32>
    %16 = arith.divf %14, %15 : vector<128x1xf32>
    %17 = vector.broadcast %9 : vector<128x1xf32> to vector<128x256xf32>
    %18 = arith.subf %5, %17 : vector<128x256xf32>
    %cst_8 = arith.constant 9.99999997E-7 : f32
    %19 = vector.broadcast %cst_8 : f32 to vector<128x1xf32>
    %20 = arith.addf %16, %19 : vector<128x1xf32>
    %21 = math.rsqrt %20 : vector<128x1xf32>
    %22 = vector.broadcast %21 : vector<128x1xf32> to vector<128x256xf32>
    %23 = arith.mulf %18, %22 : vector<128x256xf32>
    %cst_9 = arith.constant 1.000000e+00 : f32
    %24 = vector.broadcast %cst_9 : f32 to vector<1x256xf32>
    %25 = arith.addf %24, %3 : vector<1x256xf32>
    %26 = vector.broadcast %25 : vector<1x256xf32> to vector<128x256xf32>
    %27 = arith.mulf %23, %26 : vector<128x256xf32>
    %28 = vector.broadcast %2 : vector<1x256xf32> to vector<128x256xf32>
    %29 = arith.addf %27, %28 : vector<128x256xf32>
    %30 = arith.truncf %29 : vector<128x256xf32> to vector<128x256xbf16>
    %c0_10 = arith.constant 0 : index
    %c0_11 = arith.constant 0 : index
    %31 = vector.load %arg6[%c0_10, %c0_11] : memref<256x256xbf16, #tpu.memory_space<vmem>>, vector<256x256xbf16>
    %cst_12 = arith.constant dense<0.000000e+00> : vector<128x256xf32>
    %32 = tpu.matmul %30, %31, %cst_12 {dimension_numbers = #tpu.dot_dimension_numbers<[1], [0], [0], [1], [0, 0, 1, 1], [], []>} : vector<128x256xbf16>, vector<256x256xbf16>, vector<128x256xf32> -> vector<128x256xf32>
    %c0_13 = arith.constant 0 : index
    %c0_14 = arith.constant 0 : index
    %33 = vector.load %arg7[%c0_13, %c0_14] : memref<1x256xf32, #tpu.memory_space<vmem>>, vector<1x256xf32>
    %34 = vector.broadcast %33 : vector<1x256xf32> to vector<128x256xf32>
    %35 = arith.addf %32, %34 : vector<128x256xf32>
    %c0_15 = arith.constant 0 : index
    %c0_16 = arith.constant 0 : index
    %36 = vector.load %arg8[%c0_15, %c0_16] : memref<256x256xbf16, #tpu.memory_space<vmem>>, vector<256x256xbf16>
    %cst_17 = arith.constant dense<0.000000e+00> : vector<128x256xf32>
    %37 = tpu.matmul %30, %36, %cst_17 {dimension_numbers = #tpu.dot_dimension_numbers<[1], [0], [0], [1], [0, 0, 1, 1], [], []>} : vector<128x256xbf16>, vector<256x256xbf16>, vector<128x256xf32> -> vector<128x256xf32>
    %c0_18 = arith.constant 0 : index
    %c0_19 = arith.constant 0 : index
    %38 = vector.load %arg9[%c0_18, %c0_19] : memref<1x256xf32, #tpu.memory_space<vmem>>, vector<1x256xf32>
    %39 = vector.broadcast %38 : vector<1x256xf32> to vector<128x256xf32>
    %40 = arith.addf %37, %39 : vector<128x256xf32>
    %c0_20 = arith.constant 0 : index
    %c0_21 = arith.constant 0 : index
    %41 = vector.load %arg10[%c0_20, %c0_21] : memref<1x256xf32, #tpu.memory_space<vmem>>, vector<1x256xf32>
    %42 = arith.mulf %35, %35 : vector<128x256xf32>
    %cst_22 = arith.constant dense<0.000000e+00> : vector<128xf32>
    %43 = vector.multi_reduction <add>, %42, %cst_22 [1] : vector<128x256xf32> to vector<128xf32>
    %44 = vector.shape_cast %43 : vector<128xf32> to vector<128x1xf32>
    %cst_23 = arith.constant 2.560000e+02 : f32
    %45 = vector.broadcast %cst_23 : f32 to vector<128x1xf32>
    %46 = arith.divf %44, %45 : vector<128x1xf32>
    %cst_24 = arith.constant 9.99999997E-7 : f32
    %47 = vector.broadcast %cst_24 : f32 to vector<128x1xf32>
    %48 = arith.addf %46, %47 : vector<128x1xf32>
    %49 = math.rsqrt %48 : vector<128x1xf32>
    %50 = vector.broadcast %49 : vector<128x1xf32> to vector<128x256xf32>
    %51 = arith.mulf %35, %50 : vector<128x256xf32>
    %52 = vector.broadcast %41 : vector<1x256xf32> to vector<128x256xf32>
    %53 = arith.mulf %51, %52 : vector<128x256xf32>
    %c0_25 = arith.constant 0 : index
    %c0_26 = arith.constant 0 : index
    %54 = vector.load %arg4[%c0_25, %c0_26] : memref<128x128xf32, #tpu.memory_space<vmem>>, vector<128x128xf32>
    %c0_27 = arith.constant 0 : index
    %c0_28 = arith.constant 0 : index
    %55 = vector.load %arg5[%c0_27, %c0_28] : memref<128x128xf32, #tpu.memory_space<vmem>>, vector<128x128xf32>
    %56 = vector.extract_strided_slice %53 {offsets = [0, 0], sizes = [128, 128], strides = [1, 1]} : vector<128x256xf32> to vector<128x128xf32>
    %57 = arith.mulf %56, %54 : vector<128x128xf32>
    %c64_i32 = arith.constant 64 : i32
    %58 = tpu.dynamic_rotate %56 by %c64_i32 dim 1 : vector<128x128xf32>, i32 -> vector<128x128xf32>
    %59 = arith.mulf %58, %55 : vector<128x128xf32>
    %60 = arith.addf %57, %59 : vector<128x128xf32>
    %61 = tpu.transpose %60, [1, 0] : vector<128x128xf32> -> vector<128x128xf32>
    %62 = arith.truncf %61 : vector<128x128xf32> to vector<128x128xbf16>
    %c0_29 = arith.constant 0 : index
    %c0_30 = arith.constant 0 : index
    %c0_31 = arith.constant 0 : index
    %c0_32 = arith.constant 0 : index
    %63 = vector.load %arg11[%c0_29, %c0_30, %c0_31, %c0_32] : memref<1x2x128x128xbf16, #tpu.memory_space<vmem>>, vector<1x1x128x128xbf16>
    %64 = vector.shape_cast %63 : vector<1x1x128x128xbf16> to vector<128x128xbf16>
    %65 = vector.shape_cast %62 : vector<128x128xbf16> to vector<1x1x128x128xbf16>
    tpu.vector_store %arg11[%c0_29, %c0_30, %c0_31, %c0_32], %65 {strides = array<i32>} : memref<1x2x128x128xbf16, #tpu.memory_space<vmem>>, vector<1x1x128x128xbf16>,
    %66 = vector.extract_strided_slice %40 {offsets = [0, 0], sizes = [128, 128], strides = [1, 1]} : vector<128x256xf32> to vector<128x128xf32>
    %67 = arith.truncf %66 : vector<128x128xf32> to vector<128x128xbf16>
    %c0_33 = arith.constant 0 : index
    %c0_34 = arith.constant 0 : index
    %c0_35 = arith.constant 0 : index
    %c0_36 = arith.constant 0 : index
    %68 = vector.load %arg12[%c0_33, %c0_34, %c0_35, %c0_36] : memref<1x2x128x128xbf16, #tpu.memory_space<vmem>>, vector<1x1x128x128xbf16>
    %69 = vector.shape_cast %68 : vector<1x1x128x128xbf16> to vector<128x128xbf16>
    %70 = vector.shape_cast %67 : vector<128x128xbf16> to vector<1x1x128x128xbf16>
    tpu.vector_store %arg12[%c0_33, %c0_34, %c0_35, %c0_36], %70 {strides = array<i32>} : memref<1x2x128x128xbf16, #tpu.memory_space<vmem>>, vector<1x1x128x128xbf16>,
    %71 = vector.extract_strided_slice %53 {offsets = [0, 128], sizes = [128, 128], strides = [1, 1]} : vector<128x256xf32> to vector<128x128xf32>
    %72 = arith.mulf %71, %54 : vector<128x128xf32>
    %c64_i32_37 = arith.constant 64 : i32
    %73 = tpu.dynamic_rotate %71 by %c64_i32_37 dim 1 : vector<128x128xf32>, i32 -> vector<128x128xf32>
    %74 = arith.mulf %73, %55 : vector<128x128xf32>
    %75 = arith.addf %72, %74 : vector<128x128xf32>
    %76 = tpu.transpose %75, [1, 0] : vector<128x128xf32> -> vector<128x128xf32>
    %77 = arith.truncf %76 : vector<128x128xf32> to vector<128x128xbf16>
    %c0_38 = arith.constant 0 : index
    %c1 = arith.constant 1 : index
    %c0_39 = arith.constant 0 : index
    %c0_40 = arith.constant 0 : index
    %78 = vector.load %arg11[%c0_38, %c1, %c0_39, %c0_40] : memref<1x2x128x128xbf16, #tpu.memory_space<vmem>>, vector<1x1x128x128xbf16>
    %79 = vector.shape_cast %78 : vector<1x1x128x128xbf16> to vector<128x128xbf16>
    %80 = vector.shape_cast %77 : vector<128x128xbf16> to vector<1x1x128x128xbf16>
    tpu.vector_store %arg11[%c0_38, %c1, %c0_39, %c0_40], %80 {strides = array<i32>} : memref<1x2x128x128xbf16, #tpu.memory_space<vmem>>, vector<1x1x128x128xbf16>,
    %81 = vector.extract_strided_slice %40 {offsets = [0, 128], sizes = [128, 128], strides = [1, 1]} : vector<128x256xf32> to vector<128x128xf32>
    %82 = arith.truncf %81 : vector<128x128xf32> to vector<128x128xbf16>
    %c0_41 = arith.constant 0 : index
    %c1_42 = arith.constant 1 : index
    %c0_43 = arith.constant 0 : index
    %c0_44 = arith.constant 0 : index
    %83 = vector.load %arg12[%c0_41, %c1_42, %c0_43, %c0_44] : memref<1x2x128x128xbf16, #tpu.memory_space<vmem>>, vector<1x1x128x128xbf16>
    %84 = vector.shape_cast %83 : vector<1x1x128x128xbf16> to vector<128x128xbf16>
    %85 = vector.shape_cast %82 : vector<128x128xbf16> to vector<1x1x128x128xbf16>
    tpu.vector_store %arg12[%c0_41, %c1_42, %c0_43, %c0_44], %85 {strides = array<i32>} : memref<1x2x128x128xbf16, #tpu.memory_space<vmem>>, vector<1x1x128x128xbf16>,
    return
  }
  func.func @transform_0(%arg0: i32, %arg1: i32) -> (i32, i32, i32) {
    %c0_i32 = arith.constant 0 : i32
    %c0_i32_0 = arith.constant 0 : i32
    return %arg0, %arg1, %c0_i32 : i32, i32, i32
  }
  func.func @transform_1(%arg0: i32, %arg1: i32) -> (i32, i32, i32) {
    %c0_i32 = arith.constant 0 : i32
    %c0_i32_0 = arith.constant 0 : i32
    %c0_i32_1 = arith.constant 0 : i32
    return %arg0, %c0_i32, %c0_i32_0 : i32, i32, i32
  }
  func.func @transform_2(%arg0: i32, %arg1: i32) -> (i32, i32) {
    %c0_i32 = arith.constant 0 : i32
    %c0_i32_0 = arith.constant 0 : i32
    return %arg1, %c0_i32 : i32, i32
  }
  func.func @transform_3(%arg0: i32, %arg1: i32) -> (i32, i32) {
    %c0_i32 = arith.constant 0 : i32
    %c0_i32_0 = arith.constant 0 : i32
    return %arg1, %c0_i32 : i32, i32
  }
  func.func @transform_4(%arg0: i32, %arg1: i32) -> (i32, i32) {
    %c0_i32 = arith.constant 0 : i32
    %c0_i32_0 = arith.constant 0 : i32
    %c0_i32_1 = arith.constant 0 : i32
    return %c0_i32, %c0_i32_0 : i32, i32
  }
  func.func @transform_5(%arg0: i32, %arg1: i32) -> (i32, i32) {
    %c0_i32 = arith.constant 0 : i32
    %c0_i32_0 = arith.constant 0 : i32
    %c0_i32_1 = arith.constant 0 : i32
    return %c0_i32, %c0_i32_0 : i32, i32
  }
  func.func @transform_6(%arg0: i32, %arg1: i32) -> (i32, i32) {
    %c0_i32 = arith.constant 0 : i32
    %c0_i32_0 = arith.constant 0 : i32
    %c0_i32_1 = arith.constant 0 : i32
    return %c0_i32, %c0_i32_0 : i32, i32
  }
  func.func @transform_7(%arg0: i32, %arg1: i32) -> (i32, i32) {
    %c0_i32 = arith.constant 0 : i32
    %c0_i32_0 = arith.constant 0 : i32
    %c0_i32_1 = arith.constant 0 : i32
    return %c0_i32, %c0_i32_0 : i32, i32
  }
  func.func @transform_8(%arg0: i32, %arg1: i32) -> (i32, i32) {
    %c0_i32 = arith.constant 0 : i32
    %c0_i32_0 = arith.constant 0 : i32
    %c0_i32_1 = arith.constant 0 : i32
    return %c0_i32, %c0_i32_0 : i32, i32
  }
  func.func @transform_9(%arg0: i32, %arg1: i32) -> (i32, i32, i32, i32) {
    %c0_i32 = arith.constant 0 : i32
    %c0_i32_0 = arith.constant 0 : i32
    %c0_i32_1 = arith.constant 0 : i32
    return %arg0, %c0_i32, %c0_i32_0, %arg1 : i32, i32, i32, i32
  }
  func.func @transform_10(%arg0: i32, %arg1: i32) -> (i32, i32, i32, i32) {
    %c0_i32 = arith.constant 0 : i32
    %c0_i32_0 = arith.constant 0 : i32
    %c0_i32_1 = arith.constant 0 : i32
    return %arg0, %c0_i32, %arg1, %c0_i32_0 : i32, i32, i32, i32
  }
}

</mosaic_0001>

<bundles_post_ra>
// kernel: tpu_custom_call.1
= control target key start
LH: loop header
LB: loop body
LE: loop exit
PB: predicated region body
PF: predicated region fallthrough
CT: control target
= control target key end

     0   :  { %s4937_s0 = inlined_call_operand.hbm [shape: f32[2,128,256], index: 0, kind: input, shape index: {}]   ;;  %s4938_s1 = inlined_call_operand.vmem [shape: f32[2,6,256], index: 1, kind: input, shape index: {}]   ;;  %s4939_s2 = inlined_call_operand.hbm [shape: f32[128,128], index: 2, kind: input, shape index: {}]   ;;  %s4940_s3 = inlined_call_operand.hbm [shape: f32[128,128], index: 3, kind: input, shape index: {}]   ;;  %s4941_s4 = inlined_call_operand.hbm [shape: bf16[256,256], index: 4, kind: input, shape index: {}]   ;;  %s4942_s5 = inlined_call_operand.vmem [shape: f32[1,256], index: 5, kind: input, shape index: {}]   ;;  %s4943_s6 = inlined_call_operand.hbm [shape: bf16[256,256], index: 6, kind: input, shape index: {}]   ;;  %s4944_s7 = inlined_call_operand.vmem [shape: f32[1,256], index: 7, kind: input, shape index: {}]   ;;  %s4945_s8 = inlined_call_operand.vmem [shape: f32[1,256], index: 8, kind: input, shape index: {}]   ;;  %s4946_s9 = inlined_call_operand.hbm [shape: bf16[2,2,128,128], index: 9, kind: output, shape index: {0}]   ;;  %s4947_s10 = inlined_call_operand.hbm [shape: bf16[2,2,128,128], index: 10, kind: output, shape index: {1}]  }
   0x1   :  { %4956 = sst [smem:[#allocation21_spill]] %s4942_s5 }
   0x2   :  { %4957 = sst [smem:[#allocation22_spill]] %s4944_s7 }
   0x3   :  { %4958 = sst [smem:[#allocation23_spill]] %s4945_s8 }
   0x4   :  { %4959 = sst [smem:[#allocation24_spill]] %s4946_s9 }
   0x5   :  { %4960 = sst [smem:[#allocation25_spill]] %s4947_s10 }
   0x6   :  { %16 = vsyncpa [#allocation3], 0 }
   0x7   :  { %18 = vsyncpa [#allocation3 + $0x1], 0 }
   0x8   :  { %19 = vsyncpa [#allocation6], 0 }
   0x9   :  { %20 = vsyncpa [#allocation9], 0 }
   0xa   :  { %21 = vsyncpa [#allocation4], 0 }
   0xb   :  { %23 = vsyncpa [#allocation4 + $0x1], 0 }
   0xc   :  { %24 = vsyncpa [#allocation13], 0 }
   0xd   :  { %26 = vsyncpa [#allocation13 + $0x1], 0  ;;  %s3693_s13 = smov 0   ;;  %s3695_s14 = smov 0  }
   0xe   :  { %s3697_s15 = smov 0   ;;  %s3699_s16 = smov 0  }
   0xf   :  { %s3701_s17 = smov 0   ;;  %s3703_s18 = smov 0  }
  0x10 LB: > { %4961 = sst [smem:[#allocation19_spill]] %s3603_s13  ;;  %s2526_s19 = sadd.s32 4294967295, %s3623_s18   ;;  %s3623_s18 = sphi %s3703_s18, %s32_s18   ;;  %s3619_s17 = sphi %s3701_s17, %s4990_s17   ;;  %s3615_s16 = sphi %s3699_s16, %s4989_s16   ;;  %s3611_s15 = sphi %s3697_s15, %s4988_s15   ;;  %s3607_s14 = sphi %s3695_s14, %s4987_s14   ;;  %s3603_s13 = sphi %s3693_s13, %s4986_s13  }
  0x11   : > { %s2527_s20 = sadd.s32 4294967294, %s3623_s18   ;;  %p66_p0 = scmp.ne.s32.totalorder %s3607_s14, %s3603_s13 }
  0x12   : > { %p3727_p1 = scmp.eq.s32.totalorder %s2526_s19, 0  ;;  %p3731_p2 = scmp.eq.s32.totalorder %s2526_s19, 1 }
  0x13   : > { %p281_p3 = scmp.eq.s32.totalorder %s2527_s20, 1  ;;  %p2528_p5 = scmp.ge.s32.totalorder %s3623_s18, 1 }
  0x14   : > { %s4962_s21 = scalar_select %p3727_p1, 1, 0 }
  0x15   : > { %s4963_s22 = scalar_select %p3731_p2, 1, 0 }
  0x16   : > { %p3737_p4 = por %p3727_p1, %p66_p0  ;;  %p3742_p6 = por %p281_p3, %p66_p0 }
  0x17   : > { %p316_p7 = scmp.lt.s32.totalorder %s3623_s18, 3  ;;  %s3625_s26 = smov [#allocation5]  }
  0x18   : > { %s4964_s23 = scalar_select %p3737_p4, 1, 0 }
  0x19   : > { %s4965_s24 = scalar_select %p3742_p6, 1, 0 }
  0x1a   : > { %p3747_p8 = pnand %p2528_p5, %p316_p7  ;;  %s331_s27 = sshll.u32 %s3625_s26, 4  ;;  %s3751_s27 = int_to_ptr.vmem [resolvable:$true] %s331_s27 }
  0x1b   : > { %4966 = sst [smem:[#allocation20_spill]] %s4965_s24  ;;  %s3626_s29 = smov [#allocation8]  }
  0x1c   : > { %s4967_s25 = scalar_select %p3747_p8, 1, 0 }
  0x1d   : > { %p2995_p9 = pneg %p3747_p8  ;;  %s360_s30 = sshll.u32 %s3626_s29, 4  ;;  %s3762_s30 = int_to_ptr.vmem [resolvable:$true] %s360_s30 }
  0x1e   : > { %s3627_s11 = smov [#allocation7]   ;;  %s3359_s26 = scalar_lea.hbm %s4939_s2, 2048 }
  0x1f   : > { %p3758_p11 = pnand %p2995_p9, %p3727_p1  ;;  %s3764_s12 = sshll.u32 %s3627_s11, 4  ;;  %s348_s12 = int_to_ptr.vmem [resolvable:$true] %s3764_s12 }
  0x20   : > { %p3360_p12 = scmp.ne.s32.totalorder %s4939_s2, %s3359_s26  ;;  %p3366_p5 = scmp.lt.u32.totalorder %s3359_s26, %s4939_s2 }
  0x21   : > { %p3774_p13 = pneg %p3758_p11 }
  0x23   : > { %p3362_p0 = pnand %p3774_p13, %p3360_p12 }
  0x25   : > { %p3363_p3 = pneg %p3362_p0 }
  0x27   : > { %p3368_p7 = pnand %p3366_p5, %p3363_p3 }
  0x29   : > { %3371 = shalt.err (!%p3368_p7)
}
  0x2a   : > { %s3372_s13 = scalar_lea.vmem %s3751_s27, 2048  ;;  %p3380_p1 = scmp.lt.s32.totalorder %s3751_s27, %s3751_s27 }
  0x2b   : > { %p3373_p9 = scmp.ne.s32.totalorder %s3751_s27, %s3372_s13  ;;  %p3381_p4 = scmp.lt.s32.totalorder %s3372_s13, %s3372_s13 }
  0x2d   : > { %p3375_p10 = pnand %p3373_p9, %p3774_p13  ;;  %p3382_p12 = por %p3381_p4, %p3380_p1 }
  0x2f   : > { %p3376_p6 = pneg %p3375_p10 }
  0x31   : > { %p3383_p0 = pnand %p3382_p12, %p3376_p6 }
  0x33   : > { %3386 = shalt.err (!%p3383_p0)
}
  0x34   : > { %s3628_s24 = smov 128   ;;  %s3629_s19 = smov 8  }
  0x35   : > { %2998 = dma.hbm_to_vmem [thread:$0]  (!%p3758_p11), %s4939_s2, 2048, %s3751_s27, [#allocation6], %s3628_s24, %s3628_s24, %s3629_s19  }
  0x36   : > { %s3387_s13 = scalar_lea.hbm %s4941_s4, 4096 }
  0x37   : > { %p3388_p1 = scmp.ne.s32.totalorder %s4941_s4, %s3387_s13  ;;  %p3394_p10 = scmp.lt.u32.totalorder %s3387_s13, %s4941_s4 }
  0x39   : > { %p3390_p4 = pnand %p3388_p1, %p3774_p13 }
  0x3b   : > { %p3391_p6 = pneg %p3390_p4 }
  0x3d   : > { %p3396_p3 = pnand %p3394_p10, %p3391_p6 }
  0x3f   : > { %3399 = shalt.err (!%p3396_p3)
}
  0x40   : > { %s3400_s27 = scalar_lea.vmem %s3762_s30, 4096  ;;  %p3408_p12 = scmp.lt.s32.totalorder %s3762_s30, %s3762_s30 }
  0x41   : > { %p3401_p5 = scmp.ne.s32.totalorder %s3762_s30, %s3400_s27  ;;  %p3409_p0 = scmp.lt.s32.totalorder %s3400_s27, %s3400_s27 }
  0x43   : > { %p3403_p7 = pnand %p3401_p5, %p3774_p13  ;;  %p3410_p1 = por %p3409_p0, %p3408_p12 }
  0x45   : > { %p3404_p9 = pneg %p3403_p7 }
  0x47   : > { %p3411_p4 = pnand %p3410_p1, %p3404_p9 }
  0x49   : > { %3414 = shalt.err (!%p3411_p4)
}
  0x4a   : > { %3004 = dma.hbm_to_vmem [thread:$0]  (!%p3758_p11), %s4941_s4, 4096, %s3762_s30, [#allocation9], %s3628_s24, %s3628_s24, %s3629_s19  }
  0x4b   : > { %s3415_s20 = scalar_lea.hbm %s4940_s3, 2048 }
  0x4c   : > { %p3416_p6 = scmp.ne.s32.totalorder %s4940_s3, %s3415_s20  ;;  %p3422_p5 = scmp.lt.u32.totalorder %s3415_s20, %s4940_s3 }
  0x4e   : > { %p3418_p10 = pnand %p3416_p6, %p3774_p13 }
  0x50   : > { %p3419_p3 = pneg %p3418_p10 }
  0x52   : > { %p3424_p7 = pnand %p3422_p5, %p3419_p3 }
  0x54   : > { %3427 = shalt.err (!%p3424_p7)
}
  0x55   : > { %s3428_s27 = scalar_lea.vmem %s348_s12, 2048  ;;  %p3436_p1 = scmp.lt.s32.totalorder %s348_s12, %s348_s12 }
  0x56   : > { %p3429_p9 = scmp.ne.s32.totalorder %s348_s12, %s3428_s27  ;;  %p3437_p4 = scmp.lt.s32.totalorder %s3428_s27, %s3428_s27 }
  0x58   : > { %p3431_p12 = pnand %p3429_p9, %p3774_p13  ;;  %p3438_p8 = por %p3437_p4, %p3436_p1 }
  0x5a   : > { %p3432_p0 = pneg %p3431_p12 }
  0x5c   : > { %p3439_p2 = pnand %p3438_p8, %p3432_p0 }
  0x5e   : > { %3442 = shalt.err (!%p3439_p2)
}
  0x5f   : > { %3001 = dma.hbm_to_vmem [thread:$0]  (!%p3758_p11), %s4940_s3, 2048, %s348_s12, [#allocation6], %s3628_s24, %s3628_s24, %s3629_s19  }
  0x60   : > { %s3630_s7 = smov [#allocation10]   ;;  %s3443_s26 = scalar_lea.hbm %s4943_s6, 4096 }
  0x61   : > { %s376_s8 = sshll.u32 %s3630_s7, 4  ;;  %p3444_p2 = scmp.ne.s32.totalorder %s4943_s6, %s3443_s26  ;;  %s377_s8 = int_to_ptr.vmem [resolvable:$true] %s376_s8 }
  0x62   : > { %p3450_p10 = scmp.lt.u32.totalorder %s3443_s26, %s4943_s6 }
  0x63   : > { %p3446_p8 = pnand %p3444_p2, %p3774_p13 }
  0x65   : > { %p3447_p6 = pneg %p3446_p8 }
  0x67   : > { %p3452_p3 = pnand %p3450_p10, %p3447_p6 }
  0x69   : > { %3455 = shalt.err (!%p3452_p3)
}
  0x6a   : > { %s3456_s12 = scalar_lea.vmem %s377_s8, 4096  ;;  %p3464_p12 = scmp.lt.s32.totalorder %s377_s8, %s377_s8 }
  0x6b   : > { %p3457_p5 = scmp.ne.s32.totalorder %s377_s8, %s3456_s12  ;;  %p3465_p0 = scmp.lt.s32.totalorder %s3456_s12, %s3456_s12 }
  0x6d   : > { %p3459_p7 = pnand %p3457_p5, %p3774_p13  ;;  %p3466_p1 = por %p3465_p0, %p3464_p12 }
  0x6f   : > { %p3460_p9 = pneg %p3459_p7 }
  0x71   : > { %p3467_p4 = pnand %p3466_p1, %p3460_p9 }
  0x73   : > { %3470 = shalt.err (!%p3467_p4)
}
  0x74   : > { %3007 = dma.hbm_to_vmem [thread:$0]  (!%p3758_p11), %s4943_s6, 4096, %s377_s8, [#allocation9], %s3628_s24, %s3628_s24, %s3629_s19  }
  0x75   : > { %s44_s9 = sadd.s32 1, %s3619_s17  ;;  %s53_s28 = sadd.s32 1, %s3611_s15 }
  0x76   : > { %p46_p13 = scmp.ge.s32.totalorder %s44_s9, 2  ;;  %p60_p2 = scmp.ne.s32.totalorder %s3611_s15, %s3607_s14 }
  0x77   : > { %p61_p8 = scmp.eq.s32.totalorder %s3623_s18, 0  ;;  %p3023_p6 = scmp.lt.s32.totalorder %s3623_s18, 2 }
  0x78   : > { %s4992_s9 = smov (%p46_p13, %s44_s9), 0  ;;  %p4970_p3 = scmp.ne.s32.totalorder %s4963_s22, 0 }
  0x79   : > { %p62_p10 = por %p61_p8, %p60_p2  ;;  %s48_s10 = ssub.s32 %s3619_s17, %s4992_s9 }
  0x7a   : > { %p3877_p5 = por %p4970_p3, %p60_p2  ;;  %s396_s20 = sand.u32 1, %s3611_s15  }
  0x7b   : > { %p51_p7 = scmp.eq.s32.totalorder %s48_s10, 0  ;;  %s2534_s24 = sshll.u32 %s396_s20, 8 }
  0x7c   : > { %s2715_s19 = sshll.u32 %s3619_s17, 12  ;;  %s400_s22 = scalar_lea.vmem [#allocation2], %s2534_s24 }
  0x7d   : > { %s3886_s8 = scalar_select %p51_p7, %s3611_s15, %s53_s28  }
  0x7e   : > { %s3891_s11 = scalar_lea.hbm %s4937_s0, %s2715_s19  ;;  %s410_s13 = sshll.u32 %s400_s22, 4  ;;  %s3899_s13 = int_to_ptr.vmem [resolvable:$true] %s410_s13 }
  0x7f   : > { %p3895_p11 = pnand %p3023_p6, %p62_p10  ;;  %s3901_s12 = scalar_lea.sflag [#allocation3], %s396_s20 }
  0x80   : > { %s3471_s30 = scalar_lea.hbm %s3891_s11, 4096  ;;  %s3476_s10 = scalar_lea.hbm %s4937_s0, 8192 }
  0x81   : > { %p3472_p9 = scmp.ne.s32.totalorder %s3891_s11, %s3471_s30  ;;  %p3473_p12 = pneg %p3895_p11 }
  0x82   : > { %p3477_p4 = scmp.lt.u32.totalorder %s3891_s11, %s4937_s0  ;;  %p3478_p13 = scmp.lt.u32.totalorder %s3476_s10, %s3471_s30 }
  0x83   : > { %p3474_p0 = pnand %p3473_p12, %p3472_p9  ;;  %p3480_p8 = scmp.lt.u32.totalorder %s3471_s30, %s3891_s11 }
  0x84   : > { %p3479_p2 = por %p3478_p13, %p3477_p4 }
  0x85   : > { %p3475_p1 = pneg %p3474_p0 }
  0x86   : > { %p3481_p6 = por %p3480_p8, %p3479_p2 }
  0x88   : > { %p3482_p10 = pnand %p3481_p6, %p3475_p1 }
  0x8a   : > { %3485 = shalt.err (!%p3482_p10)
}
  0x8b   : > { %s3486_s20 = scalar_lea.vmem %s3899_s13, 4096  ;;  %s3631_s26 = smov [#allocation2]  }
  0x8c   : > { %p3487_p3 = scmp.ne.s32.totalorder %s3899_s13, %s3486_s20  ;;  %s3491_s29 = sshll.u32 %s3631_s26, 4  ;;  %s3492_s29 = int_to_ptr.vmem [resolvable:$false] %s3491_s29 }
  0x8d   : > { %s3493_s22 = scalar_lea.vmem %s3492_s29, 8192  ;;  %p3494_p0 = scmp.lt.s32.totalorder %s3899_s13, %s3492_s29 }
  0x8e   : > { %p3489_p7 = pnand %p3487_p3, %p3473_p12  ;;  %p3495_p4 = scmp.lt.s32.totalorder %s3493_s22, %s3486_s20 }
  0x90   : > { %p3490_p9 = pneg %p3489_p7  ;;  %p3496_p13 = por %p3495_p4, %p3494_p0 }
  0x92   : > { %p3497_p2 = pnand %p3496_p13, %p3490_p9 }
  0x94   : > { %3500 = shalt.err (!%p3497_p2)
}
  0x95   : > { %s3632_s30 = smov 256   ;;  %s3633_s5 = smov 16  }
  0x96   : > { %3011 = dma.hbm_to_vmem [thread:$0]  (!%p3895_p11), %s3891_s11, 4096, %s3899_s13, %s3901_s12, %s3632_s30, %s3632_s30, %s3633_s5  }
  0x97   : > { %p4973_p12 = scmp.ne.s32.totalorder %s4967_s25, 0 }
  0x98   : > { %s3932_s28 = sand.u32 (!%p4973_p12), 1, %s3607_s14   ;;  %p4974_p1 = scmp.ne.s32.totalorder (!%p4973_p12), %s4964_s23, 0 }
  0x99   : > { %430 = sbr.rel (%p4973_p12) target bundleno = 1201 (0x4b1), region = 56  ;;  %s2538_s10 = sshll.u32 (!%p4973_p12), %s3932_s28, 8 }
  0x9a   : > { %s433_s24 = scalar_lea.sflag (!%p4973_p12), [#allocation3], %s3932_s28  ;;  %s3936_s19 = scalar_lea.vmem (!%p4973_p12), [#allocation2], %s2538_s10 }
  0xa0   : > { %3582 = dma.done.wait (%p4974_p1), %s433_s24, 4096  }
  0xa1   : > { %3584 = vsyncadd (%p4974_p1), %s433_s24, 4294963200  ;;  %p4975_p11 = scmp.ne.s32.totalorder %s4962_s21, 0 }
  0xa3   : > { %3586 = dma.done.wait (%p4975_p11), [#allocation6], 4096  }
  0xa4   : > { %3588 = vsyncadd (%p4975_p11), [#allocation6], 4294963200 }
  0xa5   : > { %3590 = dma.done.wait (%p4975_p11), [#allocation9], 8192  }
  0xa6   : > { %3592 = vsyncadd (%p4975_p11), [#allocation9], 4294959104  ;;  %v3951_v0 = vld [vmem:[%s3936_s19] sm:$0xff]  ;;  %v3954_v1 = vld [vmem:[%s3936_s19 + $0x8] sm:$0xff]  ;;  %p500_p8 = scmp.lt.s32.totalorder %s3615_s16, 1  ;;  %s4976_s20 = sld [smem:[#allocation21_spill]] }
  0xa7   : > { %v3957_v2 = vld [vmem:[%s3936_s19 + $0x20] sm:$0xff]  ;;  %v542_v3 = vadd.f32 %v3954_v1, %v3951_v0  ;;  %v3962_v4 = vld [vmem:[%s3936_s19 + $0x28] sm:$0xff]  ;;  %v3965_v5 = vld [vmem:[%s3936_s19 + $0x10] sm:$0xff]  ;;  %s4977_s22 = sld [smem:[#allocation22_spill]]  ;;  %s2543_s30 = sshll.u32 %s3932_s28, 7 }
  0xa8   : > { %v3968_v6 = vld [vmem:[%s3936_s19 + $0x18] sm:$0xff]  ;;  %v548_v7 = vadd.f32 %v3962_v4, %v3957_v2  ;;  %v3973_v8 = vld [vmem:[%s3936_s19 + $0x30] sm:$0xff]  ;;  %v3983_v12 = vld [vmem:[%s3936_s19 + $0x40] sm:$0xff]  ;;  %s501_s21 = scalar_select %p500_p8, %s3615_s16, 1 }
  0xa9   : > { %v3976_v9 = vld [vmem:[%s3936_s19 + $0x38] sm:$0xff]  ;;  %543 = vadd.xlane.f32.xlu0 %v542_v3  ;;  %v545_v10 = vadd.f32 %v3968_v6, %v3965_v5  ;;  %v3986_v13 = vld [vmem:[%s3936_s19 + $0x48] sm:$0xff]  ;;  %v3989_v14 = vld [vmem:[%s3936_s19 + $0x50] sm:$0xff]  ;;  %s4400_s5 = scalar_lea.vmem [#allocation12], %s2543_s30  ;;  %s2319_s26 = scalar_lea.sflag [#allocation13], %s3932_s28 }
  0xaa   : > { %549 = vadd.xlane.f32.xlu1 %v548_v7  ;;  %v551_v11 = vadd.f32 %v3976_v9, %v3973_v8  ;;  %v3992_v15 = vld [vmem:[%s3936_s19 + $0x58] sm:$0xff]  ;;  %v554_v16 = vadd.f32 %v3986_v13, %v3983_v12  ;;  %v3999_v18 = vld [vmem:[%s3936_s19 + $0x60] sm:$0xff]  ;;  %v4002_v19 = vld [vmem:[%s3936_s19 + $0x68] sm:$0xff]  ;;  %s2716_s23 = sshll.u32 %s501_s21, 4  ;;  %s3634_s21 = smov 64  }
  0xab   : > { %v557_v17 = vadd.f32 %v3992_v15, %v3989_v14  ;;  %v4005_v20 = vld [vmem:[%s3936_s19 + $0x70] sm:$0xff]  ;;  %v4008_v21 = vld [vmem:[%s3936_s19 + $0x78] sm:$0xff]  ;;  %v4011_v22 = vld [vmem:[%s3936_s19 + $0x80] sm:$0xff]  ;;  %v560_v24 = vadd.f32 %v4002_v19, %v3999_v18  ;;  %s504_s13 = scalar_lea.vmem %s4938_s1, %s2716_s23  ;;  %s2781_s23 = sshll.u32 %s3615_s16, 11 }
  0xac   : > { %v4014_v23 = vld [vmem:[%s3936_s19 + $0x88] sm:$0xff]  ;;  %v4019_v25 = vld [vmem:[%s3936_s19 + $0x90] sm:$0xff]  ;;  %v4022_v26 = vld [vmem:[%s3936_s19 + $0x98] sm:$0xff]  ;;  %v563_v27 = vadd.f32 %v4008_v21, %v4005_v20 }
  0xad   : > { %546 = vadd.xlane.f32.xlu0 %v545_v10  ;;  %v4027_v28 = vld [vmem:[%s3936_s19 + $0xa0] sm:$0xff]  ;;  %v4030_v29 = vld [vmem:[%s3936_s19 + $0xa8] sm:$0xff]  ;;  %v566_v30 = vadd.f32 %v4014_v23, %v4011_v22  ;;  %v4035_v31 = vld [vmem:[%s3936_s19 + $0xb0] sm:$0xff]  ;;  %v569_v33 = vadd.f32 %v4022_v26, %v4019_v25 }
  0xae   : > { %552 = vadd.xlane.f32.xlu1 %v551_v11  ;;  %v4038_v32 = vld [vmem:[%s3936_s19 + $0xb8] sm:$0xff]  ;;  %v4043_v34 = vld [vmem:[%s3936_s19 + $0xc0] sm:$0xff]  ;;  %v4046_v35 = vld [vmem:[%s3936_s19 + $0xc8] sm:$0xff]  ;;  %v572_v36 = vadd.f32 %v4030_v29, %v4027_v28 }
  0xaf   : > { %v4051_v37 = vld [vmem:[%s3936_s19 + $0xd0] sm:$0xff]  ;;  %v4054_v38 = vld [vmem:[%s3936_s19 + $0xd8] sm:$0xff]  ;;  %v575_v39 = vadd.f32 %v4038_v32, %v4035_v31  ;;  %v4059_v40 = vld [vmem:[%s3936_s19 + $0xe0] sm:$0xff]  ;;  %v578_v42 = vadd.f32 %v4046_v35, %v4043_v34 }
  0xb0   : > { %v4062_v41 = vld [vmem:[%s3936_s19 + $0xe8] sm:$0xff]  ;;  %v4067_v43 = vld [vmem:[%s3936_s19 + $0xf0] sm:$0xff]  ;;  %v4070_v44 = vld [vmem:[%s3936_s19 + $0xf8] sm:$0xff]  ;;  %v581_v45 = vadd.f32 %v4054_v38, %v4051_v37  ;;  %s4978_s19 = sld [smem:[#allocation23_spill]] }
  0xb1   : > { %555 = vadd.xlane.f32.xlu0 %v554_v16  ;;  %v584_v46 = vadd.f32 %v4062_v41, %v4059_v40  ;;  %v587_v47 = vadd.f32 %v4070_v44, %v4067_v43  ;;  %v3199_v48 = vld [vmem:[#allocation8 + $0x4] ss:$8 sps:$4 sm:$0xff]   ;;  %v3203_v50 = vld [vmem:[#allocation8] ss:$8 sps:$4 sm:$0xff]   ;;  %v3205_v52 = vld [vmem:[#allocation8 + $0x14] ss:$8 sps:$4 sm:$0xff]  }
  0xb2   : > { %558 = vadd.xlane.f32.xlu1 %v557_v17  ;;  %v3201_v49 = vld [vmem:[#allocation10 + $0x4] ss:$8 sps:$4 sm:$0xff]   ;;  %v3204_v51 = vld [vmem:[#allocation10] ss:$8 sps:$4 sm:$0xff]   ;;  %v3207_v53 = vld [vmem:[#allocation10 + $0x14] ss:$8 sps:$4 sm:$0xff]   ;;  %1101 = vmatprep.subr.bf16.mxu0 %v3199_v48 }
  0xb3   : > { %1418 = vmatprep.subr.bf16.mxu1 %v3201_v49  ;;  %1102 = vmatpush1.bf16.msra.mxu0 %v3203_v50  ;;  %v3209_v54 = vld [vmem:[#allocation8 + $0x10] ss:$8 sps:$4 sm:$0xff]   ;;  %v3211_v56 = vld [vmem:[#allocation8 + $0x24] ss:$8 sps:$4 sm:$0xff]   ;;  %v3215_v58 = vld [vmem:[#allocation8 + $0x20] ss:$8 sps:$4 sm:$0xff]  }
  0xb4   : > { %1419 = vmatpush1.bf16.msra.mxu1 %v3204_v51  ;;  %v3210_v55 = vld [vmem:[#allocation10 + $0x10] ss:$8 sps:$4 sm:$0xff]   ;;  %1103 = vmatprep.subr.bf16.mxu0 %v3205_v52  ;;  %v3213_v57 = vld [vmem:[#allocation10 + $0x24] ss:$8 sps:$4 sm:$0xff]   ;;  %v3216_v59 = vld [vmem:[#allocation10 + $0x20] ss:$8 sps:$4 sm:$0xff]  }
  0xb5   : > { %561 = vadd.xlane.f32.xlu0 %v560_v24  ;;  %1420 = vmatprep.subr.bf16.mxu1 %v3207_v53  ;;  %v3217_v60 = vld [vmem:[#allocation8 + $0x34] ss:$8 sps:$4 sm:$0xff]   ;;  %v3221_v62 = vld [vmem:[#allocation8 + $0x30] ss:$8 sps:$4 sm:$0xff]   ;;  %v3223_v3 = vld [vmem:[#allocation8 + $0x44] ss:$8 sps:$4 sm:$0xff]  }
  0xb6   : > { %564 = vadd.xlane.f32.xlu1 %v563_v27  ;;  %v3219_v61 = vld [vmem:[#allocation10 + $0x34] ss:$8 sps:$4 sm:$0xff]   ;;  %v3222_v63 = vld [vmem:[#allocation10 + $0x30] ss:$8 sps:$4 sm:$0xff]   ;;  %v3225_v7 = vld [vmem:[#allocation10 + $0x44] ss:$8 sps:$4 sm:$0xff]  }
  0xb7   : > { %1104 = vmatpush1.bf16.msra.mxu0 %v3209_v54  ;;  %v3227_v10 = vld [vmem:[#allocation8 + $0x40] ss:$8 sps:$4 sm:$0xff]   ;;  %v3229_v16 = vld [vmem:[#allocation8 + $0x54] ss:$8 sps:$4 sm:$0xff]   ;;  %v3233_v24 = vld [vmem:[#allocation8 + $0x50] ss:$8 sps:$4 sm:$0xff]  }
  0xb8   : > { %1421 = vmatpush1.bf16.msra.mxu1 %v3210_v55  ;;  %1105 = vmatprep.subr.bf16.mxu0 %v3211_v56  ;;  %v3228_v11 = vld [vmem:[#allocation10 + $0x40] ss:$8 sps:$4 sm:$0xff]   ;;  %v3231_v17 = vld [vmem:[#allocation10 + $0x54] ss:$8 sps:$4 sm:$0xff]   ;;  %v3234_v27 = vld [vmem:[#allocation10 + $0x50] ss:$8 sps:$4 sm:$0xff]  }
  0xb9   : > { %567 = vadd.xlane.f32.xlu0 %v566_v30  ;;  %1422 = vmatprep.subr.bf16.mxu1 %v3213_v57  ;;  %v3235_v30 = vld [vmem:[#allocation8 + $0x64] ss:$8 sps:$4 sm:$0xff]   ;;  %v3251_v50 = vld [vmem:[#allocation8 + $0x80] ss:$8 sps:$4 sm:$0xff]  }
  0xba   : > { %570 = vadd.xlane.f32.xlu1 %v569_v33  ;;  %v3237_v33 = vld [vmem:[#allocation10 + $0x64] ss:$8 sps:$4 sm:$0xff]   ;;  %v3252_v51 = vld [vmem:[#allocation10 + $0x80] ss:$8 sps:$4 sm:$0xff]  }
  0xbb   : > { %1106 = vmatpush1.bf16.msra.mxu0 %v3215_v58  ;;  %v3247_v48 = vld [vmem:[#allocation8 + $0x84] ss:$8 sps:$4 sm:$0xff]  }
  0xbc   : > { %1423 = vmatpush1.bf16.msra.mxu1 %v3216_v59  ;;  %1107 = vmatprep.subr.bf16.mxu0 %v3217_v60  ;;  %v3249_v49 = vld [vmem:[#allocation10 + $0x84] ss:$8 sps:$4 sm:$0xff]  }
  0xbd   : > { %573 = vadd.xlane.f32.xlu0 %v572_v36  ;;  %1424 = vmatprep.subr.bf16.mxu1 %v3219_v61  ;;  %v3239_v36 = vld [vmem:[#allocation8 + $0x60] ss:$8 sps:$4 sm:$0xff]  }
  0xbe   : > { %576 = vadd.xlane.f32.xlu1 %v575_v39  ;;  %v3240_v39 = vld [vmem:[#allocation10 + $0x60] ss:$8 sps:$4 sm:$0xff]  }
  0xbf   : > { %1108 = vmatpush1.bf16.msra.mxu0 %v3221_v62 }
  0xc0   : > { %1425 = vmatpush1.bf16.msra.mxu1 %v3222_v63  ;;  %1109 = vmatprep.subr.bf16.mxu0 %v3223_v3 }
  0xc1   : > { %579 = vadd.xlane.f32.xlu0 %v578_v42  ;;  %1426 = vmatprep.subr.bf16.mxu1 %v3225_v7  ;;  %v3241_v42 = vld [vmem:[#allocation8 + $0x74] ss:$8 sps:$4 sm:$0xff]  }
  0xc2   : > { %582 = vadd.xlane.f32.xlu1 %v581_v45  ;;  %v3243_v45 = vld [vmem:[#allocation10 + $0x74] ss:$8 sps:$4 sm:$0xff]  }
  0xc3   : > { %1110 = vmatpush1.bf16.msra.mxu0 %v3227_v10 }
  0xc4   : > { %1427 = vmatpush1.bf16.msra.mxu1 %v3228_v11  ;;  %1111 = vmatprep.subr.bf16.mxu0 %v3229_v16 }
  0xc5   : > { %585 = vadd.xlane.f32.xlu0 %v584_v46  ;;  %1428 = vmatprep.subr.bf16.mxu1 %v3231_v17  ;;  %v3245_v46 = vld [vmem:[#allocation8 + $0x70] ss:$8 sps:$4 sm:$0xff]  }
  0xc6   : > { %588 = vadd.xlane.f32.xlu1 %v587_v47  ;;  %v3246_v47 = vld [vmem:[#allocation10 + $0x70] ss:$8 sps:$4 sm:$0xff]  }
  0xc7   : > { %1112 = vmatpush1.bf16.msra.mxu0 %v3233_v24 }
  0xc8   : > { %1429 = vmatpush1.bf16.msra.mxu1 %v3234_v27  ;;  %1113 = vmatprep.subr.bf16.mxu0 %v3235_v30 }
  0xc9   : > { %1430 = vmatprep.subr.bf16.mxu1 %v3237_v33 }
  0xcb   : > { %1114 = vmatpush1.bf16.msra.mxu0 %v3239_v36 }
  0xcc   : > { %1431 = vmatpush1.bf16.msra.mxu1 %v3240_v39  ;;  %1115 = vmatprep.subr.bf16.mxu0 %v3241_v42 }
  0xcd   : > { %1432 = vmatprep.subr.bf16.mxu1 %v3243_v45 }
  0xcf   : > { %1116 = vmatpush1.bf16.msra.mxu0 %v3245_v46 }
  0xd0   : > { %1433 = vmatpush1.bf16.msra.mxu1 %v3246_v47  ;;  %1117 = vmatprep.subr.bf16.mxu0 %v3247_v48 }
  0xd1   : > { %1434 = vmatprep.subr.bf16.mxu1 %v3249_v49 }
  0xd3   : > { %1118 = vmatpush1.bf16.msra.mxu0 %v3251_v50 }
  0xd4   : > { %1435 = vmatpush1.bf16.msra.mxu1 %v3252_v51 }
 0x136   : > { %v544_v52 = vpop.xlane.xlu0 %543 }
 0x137   : > { %v591_v53 = vmul.f32 0.00390625, %v544_v52  ;;  %v550_v54 = vpop.xlane.xlu1 %549 }
 0x138   : > { %v593_v55 = vmul.f32 0.00390625, %v550_v54 }
 0x139   : > { %v4079_v56 = vsub.f32 %v3951_v0, %v591_v53  ;;  %v4082_v57 = vsub.f32 %v3954_v1, %v591_v53 }
 0x13a   : > { %v4085_v58 = vsub.f32 %v3957_v2, %v593_v55  ;;  %v4088_v59 = vsub.f32 %v3962_v4, %v593_v55  ;;  %v547_v60 = vpop.xlane.xlu0 %546 }
 0x13b   : > { %v592_v61 = vmul.f32 0.00390625, %v547_v60  ;;  %v553_v62 = vpop.xlane.xlu1 %552  ;;  %v639_v63 = vmul.f32 %v4079_v56, %v4079_v56  ;;  %v640_v3 = vmul.f32 %v4082_v57, %v4082_v57 }
 0x13c   : > { %v594_v0 = vmul.f32 0.00390625, %v553_v62  ;;  %v643_v1 = vmul.f32 %v4085_v58, %v4085_v58  ;;  %v644_v2 = vmul.f32 %v4088_v59, %v4088_v59 }
 0x13d   : > { %v4099_v7 = vsub.f32 %v3965_v5, %v592_v61  ;;  %v4102_v4 = vsub.f32 %v3968_v6, %v592_v61  ;;  %v671_v10 = vadd.f32 %v640_v3, %v639_v63 }
 0x13e   : > { %v4105_v11 = vsub.f32 %v3973_v8, %v594_v0  ;;  %v4108_v16 = vsub.f32 %v3976_v9, %v594_v0  ;;  %v556_v17 = vpop.xlane.xlu0 %555  ;;  %v677_v30 = vadd.f32 %v644_v2, %v643_v1 }
 0x13f   : > { %v595_v24 = vmul.f32 0.00390625, %v556_v17  ;;  %672 = vadd.xlane.f32.xlu0 %v671_v10  ;;  %v559_v27 = vpop.xlane.xlu1 %558  ;;  %v641_v33 = vmul.f32 %v4099_v7, %v4099_v7  ;;  %v642_v5 = vmul.f32 %v4102_v4, %v4102_v4 }
 0x140   : > { %v596_v6 = vmul.f32 0.00390625, %v559_v27  ;;  %v645_v36 = vmul.f32 %v4105_v11, %v4105_v11  ;;  %v646_v8 = vmul.f32 %v4108_v16, %v4108_v16 }
 0x141   : > { %v4119_v9 = vsub.f32 %v3983_v12, %v595_v24  ;;  %v4122_v39 = vsub.f32 %v3986_v13, %v595_v24  ;;  %v674_v42 = vadd.f32 %v642_v5, %v641_v33 }
 0x142   : > { %v4125_v45 = vsub.f32 %v3989_v14, %v596_v6  ;;  %v4128_v46 = vsub.f32 %v3992_v15, %v596_v6  ;;  %v562_v47 = vpop.xlane.xlu0 %561  ;;  %v680_v50 = vadd.f32 %v646_v8, %v645_v36  ;;  %v3253_v6 = vld [vmem:[#allocation8 + $0x94] ss:$8 sps:$4 sm:$0xff]  }
 0x143   : > { %v597_v48 = vmul.f32 0.00390625, %v562_v47  ;;  %678 = vadd.xlane.f32.xlu0 %v677_v30  ;;  %675 = vadd.xlane.f32.xlu1 %v674_v42  ;;  %v565_v49 = vpop.xlane.xlu1 %564  ;;  %v647_v12 = vmul.f32 %v4119_v9, %v4119_v9  ;;  %v648_v13 = vmul.f32 %v4122_v39, %v4122_v39  ;;  %v3255_v36 = vld [vmem:[#allocation10 + $0x94] ss:$8 sps:$4 sm:$0xff]   ;;  %v3257_v42 = vld [vmem:[#allocation8 + $0x90] ss:$8 sps:$4 sm:$0xff]  }
 0x144   : > { %v598_v51 = vmul.f32 0.00390625, %v565_v49  ;;  %v649_v14 = vmul.f32 %v4125_v45, %v4125_v45  ;;  %v650_v15 = vmul.f32 %v4128_v46, %v4128_v46  ;;  %v3258_v47 = vld [vmem:[#allocation10 + $0x90] ss:$8 sps:$4 sm:$0xff]   ;;  %1119 = vmatprep.subr.bf16.mxu0 %v3253_v6  ;;  %1436 = vmatprep.subr.bf16.mxu1 %v3255_v36  ;;  %v3267_v6 = vld [vmem:[#allocation10 + $0xb4] ss:$8 sps:$4 sm:$0xff]  }
 0x145   : > { %v4139_v52 = vsub.f32 %v3999_v18, %v597_v48  ;;  %v4142_v53 = vsub.f32 %v4002_v19, %v597_v48  ;;  %v683_v54 = vadd.f32 %v648_v13, %v647_v12  ;;  %1120 = vmatpush1.bf16.msra.mxu0 %v3257_v42  ;;  %1437 = vmatpush1.bf16.msra.mxu1 %v3258_v47  ;;  %v3270_v42 = vld [vmem:[#allocation10 + $0xb0] ss:$8 sps:$4 sm:$0xff]  }
 0x146   : > { %v4145_v55 = vsub.f32 %v4005_v20, %v598_v51  ;;  %v4148_v60 = vsub.f32 %v4008_v21, %v598_v51  ;;  %v568_v61 = vpop.xlane.xlu0 %567  ;;  %v686_v3 = vadd.f32 %v650_v15, %v649_v14 }
 0x147   : > { %v599_v62 = vmul.f32 0.00390625, %v568_v61  ;;  %681 = vadd.xlane.f32.xlu1 %v680_v50  ;;  %684 = vadd.xlane.f32.xlu0 %v683_v54  ;;  %v571_v63 = vpop.xlane.xlu1 %570  ;;  %v651_v18 = vmul.f32 %v4139_v52, %v4139_v52  ;;  %v652_v19 = vmul.f32 %v4142_v53, %v4142_v53 }
 0x148   : > { %v600_v0 = vmul.f32 0.00390625, %v571_v63  ;;  %v653_v20 = vmul.f32 %v4145_v55, %v4145_v55  ;;  %v654_v21 = vmul.f32 %v4148_v60, %v4148_v60  ;;  %v3261_v63 = vld [vmem:[#allocation10 + $0xa4] ss:$8 sps:$4 sm:$0xff]  }
 0x149   : > { %v4159_v1 = vsub.f32 %v4011_v22, %v599_v62  ;;  %v4162_v2 = vsub.f32 %v4014_v23, %v599_v62  ;;  %v689_v10 = vadd.f32 %v652_v19, %v651_v18  ;;  %v3259_v62 = vld [vmem:[#allocation8 + $0xa4] ss:$8 sps:$4 sm:$0xff]   ;;  %1438 = vmatprep.subr.bf16.mxu1 %v3261_v63  ;;  %v3282_v63 = vld [vmem:[#allocation10 + $0xd0] ss:$8 sps:$4 sm:$0xff]  }
 0x14a   : > { %v4165_v17 = vsub.f32 %v4019_v25, %v600_v0  ;;  %v4168_v24 = vsub.f32 %v4022_v26, %v600_v0  ;;  %v574_v27 = vpop.xlane.xlu0 %573  ;;  %v692_v5 = vadd.f32 %v654_v21, %v653_v20  ;;  %v3263_v0 = vld [vmem:[#allocation8 + $0xa0] ss:$8 sps:$4 sm:$0xff]   ;;  %1121 = vmatprep.subr.bf16.mxu0 %v3259_v62  ;;  %v3281_v62 = vld [vmem:[#allocation8 + $0xd0] ss:$8 sps:$4 sm:$0xff]  }
 0x14b   : > { %v601_v30 = vmul.f32 0.00390625, %v574_v27  ;;  %687 = vadd.xlane.f32.xlu1 %v686_v3  ;;  %690 = vadd.xlane.f32.xlu0 %v689_v10  ;;  %v577_v33 = vpop.xlane.xlu1 %576  ;;  %v655_v22 = vmul.f32 %v4159_v1, %v4159_v1  ;;  %v656_v23 = vmul.f32 %v4162_v2, %v4162_v2  ;;  %v3264_v20 = vld [vmem:[#allocation10 + $0xa0] ss:$8 sps:$4 sm:$0xff]  }
 0x14c   : > { %v602_v8 = vmul.f32 0.00390625, %v577_v33  ;;  %v657_v25 = vmul.f32 %v4165_v17, %v4165_v17  ;;  %v658_v26 = vmul.f32 %v4168_v24, %v4168_v24  ;;  %1122 = vmatpush1.bf16.msra.mxu0 %v3263_v0  ;;  %1439 = vmatpush1.bf16.msra.mxu1 %v3264_v20  ;;  %v3285_v0 = vld [vmem:[#allocation10 + $0xe4] ss:$8 sps:$4 sm:$0xff]   ;;  %v3287_v20 = vld [vmem:[#allocation8 + $0xe0] ss:$8 sps:$4 sm:$0xff]  }
 0x14d   : > { %v4179_v48 = vsub.f32 %v4027_v28, %v601_v30  ;;  %v4182_v49 = vsub.f32 %v4030_v29, %v601_v30  ;;  %v695_v50 = vadd.f32 %v656_v23, %v655_v22  ;;  %v3265_v23 = vld [vmem:[#allocation8 + $0xb4] ss:$8 sps:$4 sm:$0xff]   ;;  %1440 = vmatprep.subr.bf16.mxu1 %v3267_v6 }
 0x14e   : > { %v4185_v12 = vsub.f32 %v4035_v31, %v602_v8  ;;  %v4188_v13 = vsub.f32 %v4038_v32, %v602_v8  ;;  %v580_v51 = vpop.xlane.xlu0 %579  ;;  %v698_v15 = vadd.f32 %v658_v26, %v657_v25  ;;  %v3269_v26 = vld [vmem:[#allocation8 + $0xb0] ss:$8 sps:$4 sm:$0xff]   ;;  %1123 = vmatprep.subr.bf16.mxu0 %v3265_v23 }
 0x14f   : > { %v603_v14 = vmul.f32 0.00390625, %v580_v51  ;;  %693 = vadd.xlane.f32.xlu1 %v692_v5  ;;  %696 = vadd.xlane.f32.xlu0 %v695_v50  ;;  %v583_v28 = vpop.xlane.xlu1 %582  ;;  %v659_v29 = vmul.f32 %v4179_v48, %v4179_v48  ;;  %v660_v54 = vmul.f32 %v4182_v49, %v4182_v49 }
 0x150   : > { %v604_v61 = vmul.f32 0.00390625, %v583_v28  ;;  %v661_v31 = vmul.f32 %v4185_v12, %v4185_v12  ;;  %v662_v32 = vmul.f32 %v4188_v13, %v4188_v13  ;;  %1124 = vmatpush1.bf16.msra.mxu0 %v3269_v26  ;;  %1441 = vmatpush1.bf16.msra.mxu1 %v3270_v42  ;;  %v3273_v28 = vld [vmem:[#allocation10 + $0xc4] ss:$8 sps:$4 sm:$0xff]  }
 0x151   : > { %v4199_v3 = vsub.f32 %v4043_v34, %v603_v14  ;;  %v4202_v18 = vsub.f32 %v4046_v35, %v603_v14  ;;  %v701_v19 = vadd.f32 %v660_v54, %v659_v29  ;;  %v3275_v29 = vld [vmem:[#allocation8 + $0xc0] ss:$8 sps:$4 sm:$0xff]   ;;  %1442 = vmatprep.subr.bf16.mxu1 %v3273_v28 }
 0x152   : > { %v4205_v21 = vsub.f32 %v4051_v37, %v604_v61  ;;  %v4208_v10 = vsub.f32 %v4054_v38, %v604_v61  ;;  %v586_v27 = vpop.xlane.xlu0 %585  ;;  %v704_v33 = vadd.f32 %v662_v32, %v661_v31  ;;  %v3276_v54 = vld [vmem:[#allocation10 + $0xc0] ss:$8 sps:$4 sm:$0xff]   ;;  %v3277_v31 = vld [vmem:[#allocation8 + $0xd4] ss:$8 sps:$4 sm:$0xff]  }
 0x153   : > { %v605_v30 = vmul.f32 0.00390625, %v586_v27  ;;  %699 = vadd.xlane.f32.xlu1 %v698_v15  ;;  %702 = vadd.xlane.f32.xlu0 %v701_v19  ;;  %v589_v34 = vpop.xlane.xlu1 %588  ;;  %v663_v35 = vmul.f32 %v4199_v3, %v4199_v3  ;;  %v664_v5 = vmul.f32 %v4202_v18, %v4202_v18  ;;  %v3279_v32 = vld [vmem:[#allocation10 + $0xd4] ss:$8 sps:$4 sm:$0xff]   ;;  %v3283_v19 = vld [vmem:[#allocation8 + $0xe4] ss:$8 sps:$4 sm:$0xff]  }
 0x154   : > { %v606_v22 = vmul.f32 0.00390625, %v589_v34  ;;  %v665_v37 = vmul.f32 %v4205_v21, %v4205_v21  ;;  %v666_v38 = vmul.f32 %v4208_v10, %v4208_v10  ;;  %1443 = vmatpush1.bf16.msra.mxu1 %v3276_v54  ;;  %v3288_v27 = vld [vmem:[#allocation10 + $0xe0] ss:$8 sps:$4 sm:$0xff]   ;;  %v3291_v34 = vld [vmem:[#allocation10 + $0xf4] ss:$8 sps:$4 sm:$0xff]  }
 0x155   : > { %v4219_v36 = vsub.f32 %v4059_v40, %v605_v30  ;;  %v4222_v8 = vsub.f32 %v4062_v41, %v605_v30  ;;  %v707_v25 = vadd.f32 %v664_v5, %v663_v35  ;;  %1444 = vmatprep.subr.bf16.mxu1 %v3279_v32  ;;  %v3289_v30 = vld [vmem:[#allocation8 + $0xf4] ss:$8 sps:$4 sm:$0xff]   ;;  %v3294_v35 = vld [vmem:[#allocation10 + $0xf0] ss:$8 sps:$4 sm:$0xff]  }
 0x156   : > { %v4225_v47 = vsub.f32 %v4067_v43, %v606_v22  ;;  %v4228_v50 = vsub.f32 %v4070_v44, %v606_v22  ;;  %v710_v51 = vadd.f32 %v666_v38, %v665_v37  ;;  %v3271_v44 = vld [vmem:[#allocation8 + $0xc4] ss:$8 sps:$4 sm:$0xff]   ;;  %v801_v37 = vlaneseq }
 0x157   : > { %705 = vadd.xlane.f32.xlu1 %v704_v33  ;;  %708 = vadd.xlane.f32.xlu0 %v707_v25  ;;  %v667_v40 = vmul.f32 %v4219_v36, %v4219_v36  ;;  %v668_v41 = vmul.f32 %v4222_v8, %v4222_v8  ;;  %v3293_v33 = vld [vmem:[#allocation8 + $0xf0] ss:$8 sps:$4 sm:$0xff]  }
 0x158   : > { %v669_v14 = vmul.f32 %v4225_v47, %v4225_v47  ;;  %v670_v43 = vmul.f32 %v4228_v50, %v4228_v50  ;;  %1125 = vmatprep.subr.bf16.mxu0 %v3271_v44  ;;  %1445 = vmatpush1.bf16.msra.mxu1 %v3282_v63  ;;  %v802_v42 = vshrl.u32 %v801_v37, 7  ;;  %v509_v44 = vld [vmem:[%s504_s13 + $0x8] sm:$0x3f] }
 0x159   : > { %v713_v15 = vadd.f32 %v668_v41, %v667_v40  ;;  %1126 = vmatpush1.bf16.msra.mxu0 %v3275_v29  ;;  %1446 = vmatprep.subr.bf16.mxu1 %v3285_v0  ;;  %v508_v41 = vld [vmem:[%s504_s13] sm:$0x3f]  ;;  %s4979_s13 = sld [smem:[#allocation25_spill]] }
 0x15a   : > { %v716_v61 = vadd.f32 %v670_v43, %v669_v14  ;;  %1127 = vmatprep.subr.bf16.mxu0 %v3277_v31  ;;  %v799_v29 = vadd.f32 1.0, %v508_v41  ;;  %v800_v31 = vadd.f32 1.0, %v509_v44  ;;  %v4243_v32 = vsub.s32 1, %v802_v42 }
 0x15b   : > { %711 = vadd.xlane.f32.xlu1 %v710_v51  ;;  %714 = vadd.xlane.f32.xlu0 %v713_v15 }
 0x15c   : > { %1447 = vmatpush1.bf16.msra.mxu1 %v3288_v27 }
 0x15d   : > { %1128 = vmatpush1.bf16.msra.mxu0 %v3281_v62  ;;  %1448 = vmatprep.subr.bf16.mxu1 %v3291_v34  ;;  %v4248_v34 = vrot.slane %v800_v31, %v4243_v32 }
 0x15e   : > { %1129 = vmatprep.subr.bf16.mxu0 %v3283_v19 }
 0x15f   : > { %717 = vadd.xlane.f32.xlu1 %v716_v61  ;;  %s4980_s27 = smov %s4979_s13  ;;  %s4825_s12 = scalar_lea.hbm %s4979_s13, %s2781_s23 }
 0x160   : > { %1449 = vmatpush1.bf16.msra.mxu1 %v3294_v35 }
 0x161   : > { %1130 = vmatpush1.bf16.msra.mxu0 %v3287_v20  ;;  %v4245_v20 = vsub.s32 0, %v802_v42 }
 0x162   : > { %1131 = vmatprep.subr.bf16.mxu0 %v3289_v30 }
 0x165   : > { %1132 = vmatpush1.bf16.msra.mxu0 %v3293_v33  ;;  %v4251_v33 = vrot.slane %v799_v29, %v4243_v32 }
 0x1cc   : > { %v673_v5 = vpop.xlane.xlu0 %672 }
 0x1cd   : > { %v719_v22 = vmul.f32 0.00390625, %v673_v5 }
 0x1cf   : > { %v735_v38 = vadd.f32 1e-06, %v719_v22 }
 0x1d0   : > { %v676_v23 = vpop.xlane.xlu1 %675  ;;  %v679_v6 = vpop.xlane.xlu0 %678 }
 0x1d1   : > { %3295 = vrsqrt.f32 %v735_v38  ;;  %v720_v25 = vmul.f32 0.00390625, %v676_v23  ;;  %v721_v26 = vmul.f32 0.00390625, %v679_v6  ;;  %v4256_v6 = vrot.slane %v509_v44, %v4245_v20 }
 0x1d3   : > { %v736_v51 = vadd.f32 1e-06, %v720_v25  ;;  %v737_v40 = vadd.f32 1e-06, %v721_v26 }
 0x1d4   : > { %v682_v14 = vpop.xlane.xlu1 %681  ;;  %v685_v43 = vpop.xlane.xlu0 %684 }
 0x1d5   : > { %3297 = vrsqrt.f32 %v736_v51  ;;  %v722_v28 = vmul.f32 0.00390625, %v682_v14  ;;  %v723_v15 = vmul.f32 0.00390625, %v685_v43 }
 0x1d6   : > { %3299 = vrsqrt.f32 %v737_v40  ;;  %v4261_v40 = vrot.slane %v508_v41, %v4245_v20 }
 0x1d7   : > { %v738_v54 = vadd.f32 1e-06, %v722_v28  ;;  %v739_v61 = vadd.f32 1e-06, %v723_v15 }
 0x1d8   : > { %v688_v62 = vpop.xlane.xlu1 %687  ;;  %v691_v63 = vpop.xlane.xlu0 %690 }
 0x1d9   : > { %3301 = vrsqrt.f32 %v738_v54  ;;  %v724_v19 = vmul.f32 0.00390625, %v688_v62  ;;  %v725_v0 = vmul.f32 0.00390625, %v691_v63 }
 0x1da   : > { %3303 = vrsqrt.f32 %v739_v61 }
 0x1db   : > { %v3296_v27 = vpop.eup %3295  ;;  %v740_v30 = vadd.f32 1e-06, %v724_v19  ;;  %v741_v35 = vadd.f32 1e-06, %v725_v0 }
 0x1dc   : > { %v694_v5 = vpop.xlane.xlu1 %693  ;;  %v768_v22 = vmul.f32 %v3296_v27, %v4082_v57  ;;  %v767_v37 = vmul.f32 %v3296_v27, %v4079_v56  ;;  %v697_v23 = vpop.xlane.xlu0 %696 }
 0x1dd   : > { %3305 = vrsqrt.f32 %v740_v30  ;;  %v726_v38 = vmul.f32 0.00390625, %v694_v5  ;;  %v727_v28 = vmul.f32 0.00390625, %v697_v23 }
 0x1de   : > { %v810_v42 = vmul.f32 %v4248_v34, %v768_v22  ;;  %v809_v51 = vmul.f32 %v4251_v33, %v767_v37  ;;  %3307 = vrsqrt.f32 %v741_v35 }
 0x1df   : > { %v3298_v25 = vpop.eup %3297  ;;  %v742_v26 = vadd.f32 1e-06, %v726_v38  ;;  %v743_v30 = vadd.f32 1e-06, %v727_v28 }
 0x1e0   : > { %v3300_v14 = vpop.eup %3299  ;;  %v700_v57 = vpop.xlane.xlu1 %699  ;;  %v770_v56 = vmul.f32 %v3298_v25, %v4102_v4  ;;  %v769_v43 = vmul.f32 %v3298_v25, %v4099_v7  ;;  %v850_v41 = vadd.f32 %v4256_v6, %v810_v42  ;;  %v849_v62 = vadd.f32 %v4261_v40, %v809_v51 }
 0x1e1   : > { %3309 = vrsqrt.f32 %v742_v26  ;;  %v728_v44 = vmul.f32 0.00390625, %v700_v57  ;;  %v772_v15 = vmul.f32 %v3300_v14, %v4088_v59  ;;  %v771_v35 = vmul.f32 %v3300_v14, %v4085_v58  ;;  %v703_v5 = vpop.xlane.xlu0 %702 }
 0x1e2   : > { %v812_v29 = vmul.f32 %v4248_v34, %v770_v56  ;;  %v811_v54 = vmul.f32 %v4251_v33, %v769_v43  ;;  %v729_v51 = vmul.f32 0.00390625, %v703_v5 }
 0x1e3   : > { %v3302_v61 = vpop.eup %3301  ;;  %v744_v31 = vadd.f32 1e-06, %v728_v44  ;;  %v814_v63 = vmul.f32 %v4248_v34, %v772_v15  ;;  %v813_v14 = vmul.f32 %v4251_v33, %v771_v35 }
 0x1e4   : > { %v706_v4 = vpop.xlane.xlu1 %705  ;;  %v852_v7 = vadd.f32 %v4256_v6, %v812_v29  ;;  %v851_v19 = vadd.f32 %v4261_v40, %v811_v54  ;;  %v774_v0 = vmul.f32 %v3302_v61, %v4108_v16  ;;  %v773_v59 = vmul.f32 %v3302_v61, %v4105_v11  ;;  %v3304_v27 = vpop.eup %3303 }
 0x1e5   : > { %3311 = vrsqrt.f32 %v744_v31  ;;  %v730_v25 = vmul.f32 0.00390625, %v706_v4  ;;  %v854_v26 = vadd.f32 %v4256_v6, %v814_v63  ;;  %v776_v16 = vmul.f32 %v3304_v27, %v4122_v39 }
 0x1e6   : > { %v882_v22 = vpack.c.bf16 %v852_v7, %v850_v41  ;;  %v881_v37 = vpack.c.bf16 %v851_v19, %v849_v62  ;;  %v816_v38 = vmul.f32 %v4248_v34, %v774_v0  ;;  %v815_v42 = vmul.f32 %v4251_v33, %v773_v59  ;;  %v709_v62 = vpop.xlane.xlu0 %708 }
 0x1e7   : > { %v3306_v23 = vpop.eup %3305  ;;  %3313 = vrsqrt.f32 %v743_v30  ;;  %v818_v43 = vmul.f32 %v4248_v34, %v776_v16  ;;  %v746_v44 = vadd.f32 1e-06, %v730_v25  ;;  %v853_v61 = vadd.f32 %v4261_v40, %v813_v14 }
 0x1e8   : > { %1133 = vmatprep.mubr.bf16.mxu0 %v882_v22  ;;  %1450 = vmatprep.mubr.bf16.mxu1 %v882_v22  ;;  %v856_v11 = vadd.f32 %v4256_v6, %v816_v38  ;;  %v778_v58 = vmul.f32 %v3306_v23, %v4128_v46  ;;  %v3308_v57 = vpop.eup %3307  ;;  %v855_v15 = vadd.f32 %v4261_v40, %v815_v42  ;;  %v712_v54 = vpop.xlane.xlu1 %711  ;;  %v745_v46 = vadd.f32 1e-06, %v729_v51 }
 0x1e9   : > { %1134 = vmatmul.mubr.bf16.vlgmr.msra.gmra.mrb[0].mxu0 %v881_v37  ;;  %1451 = vmatmul.mubr.bf16.vlgmr.msra.gmra.mrb[0].mxu1 %v881_v37  ;;  %v777_v39 = vmul.f32 %v3306_v23, %v4125_v45  ;;  %v775_v41 = vmul.f32 %v3304_v27, %v4119_v9  ;;  %v858_v63 = vadd.f32 %v4256_v6, %v818_v43  ;;  %3315 = vrsqrt.f32 %v746_v44 }
 0x1ea   : > { %v884_v56 = vpack.c.bf16 %v856_v11, %v854_v26  ;;  %v820_v29 = vmul.f32 %v4248_v34, %v778_v58  ;;  %v780_v4 = vmul.f32 %v3308_v57, %v4142_v53  ;;  %v732_v19 = vmul.f32 0.00390625, %v712_v54  ;;  %v715_v16 = vpop.xlane.xlu0 %714 }
 0x1eb   : > { %v3310_v28 = vpop.eup %3309  ;;  %v883_v0 = vpack.c.bf16 %v855_v15, %v853_v61  ;;  %v819_v59 = vmul.f32 %v4251_v33, %v777_v39  ;;  %3317 = vrsqrt.f32 %v745_v46  ;;  %v731_v5 = vmul.f32 0.00390625, %v709_v62 }
 0x1ec   : > { %1143 = vmatprep.mubr.bf16.mxu0 %v884_v56  ;;  %1460 = vmatprep.mubr.bf16.mxu1 %v884_v56  ;;  %v860_v31 = vadd.f32 %v4256_v6, %v820_v29  ;;  %v782_v7 = vmul.f32 %v3310_v28, %v4148_v60  ;;  %v817_v9 = vmul.f32 %v4251_v33, %v775_v41  ;;  %v748_v27 = vadd.f32 1e-06, %v732_v19  ;;  %v718_v38 = vpop.xlane.xlu1 %717 }
 0x1ed   : > { %v822_v53 = vmul.f32 %v4248_v34, %v780_v4  ;;  %v859_v22 = vadd.f32 %v4261_v40, %v819_v59  ;;  %v781_v37 = vmul.f32 %v3310_v28, %v4145_v55  ;;  %v747_v26 = vadd.f32 1e-06, %v731_v5 }
 0x1ee   : > { %v886_v45 = vpack.c.bf16 %v860_v31, %v858_v63  ;;  %v824_v30 = vmul.f32 %v4248_v34, %v782_v7  ;;  %v857_v42 = vadd.f32 %v4261_v40, %v817_v9  ;;  %v779_v11 = vmul.f32 %v3308_v57, %v4139_v52 }
 0x1ef   : > { %v3312_v35 = vpop.eup %3311  ;;  %v862_v58 = vadd.f32 %v4256_v6, %v822_v53  ;;  %3319 = vrsqrt.f32 %v748_v27  ;;  %v734_v14 = vmul.f32 0.00390625, %v718_v38  ;;  %v823_v55 = vmul.f32 %v4251_v33, %v781_v37 }
 0x1f0   : > { %v864_v23 = vadd.f32 %v4256_v6, %v824_v30  ;;  %v786_v25 = vmul.f32 %v3312_v35, %v4168_v24  ;;  %v885_v56 = vpack.c.bf16 %v859_v22, %v857_v42  ;;  %3321 = vrsqrt.f32 %v747_v26 }
 0x1f1   : > { %1144 = vmatmul.mubr.bf16.gmra.mrb[4].mxu0 %v883_v0  ;;  %1461 = vmatmul.mubr.bf16.gmra.mrb[4].mxu1 %v883_v0  ;;  %v3314_v60 = vpop.eup %3313  ;;  %v733_v24 = vmul.f32 0.00390625, %v715_v16  ;;  %v821_v52 = vmul.f32 %v4251_v33, %v779_v11  ;;  %v750_v15 = vadd.f32 1e-06, %v734_v14  ;;  %v863_v29 = vadd.f32 %v4261_v40, %v823_v55 }
 0x1f2   : > { %1153 = vmatprep.mubr.bf16.mxu0 %v886_v45  ;;  %1470 = vmatprep.mubr.bf16.mxu1 %v886_v45  ;;  %v784_v51 = vmul.f32 %v3314_v60, %v4162_v2  ;;  %v888_v43 = vpack.c.bf16 %v864_v23, %v862_v58  ;;  %v828_v28 = vmul.f32 %v4248_v34, %v786_v25 }
 0x1f3   : > { %v3316_v44 = vpop.eup %3315  ;;  %v785_v54 = vmul.f32 %v3312_v35, %v4165_v17  ;;  %v749_v61 = vadd.f32 1e-06, %v733_v24  ;;  %v861_v31 = vadd.f32 %v4261_v40, %v821_v52  ;;  %v783_v41 = vmul.f32 %v3314_v60, %v4159_v1 }
 0x1f4   : > { %v826_v57 = vmul.f32 %v4248_v34, %v784_v51  ;;  %v868_v39 = vadd.f32 %v4256_v6, %v828_v28  ;;  %v790_v46 = vmul.f32 %v3316_v44, %v4188_v13  ;;  %3323 = vrsqrt.f32 %v750_v15 }
 0x1f5   : > { %v3318_v2 = vpop.eup %3317  ;;  %v887_v4 = vpack.c.bf16 %v863_v29, %v861_v31  ;;  %v827_v7 = vmul.f32 %v4251_v33, %v785_v54  ;;  %3325 = vrsqrt.f32 %v749_v61  ;;  %v825_v13 = vmul.f32 %v4251_v33, %v783_v41 }
 0x1f6   : > { %v866_v62 = vadd.f32 %v4256_v6, %v826_v57  ;;  %v788_v63 = vmul.f32 %v3318_v2, %v4182_v49  ;;  %v832_v17 = vmul.f32 %v4248_v34, %v790_v46  ;;  %v789_v45 = vmul.f32 %v3316_v44, %v4185_v12 }
 0x1f7   : > { %v867_v49 = vadd.f32 %v4261_v40, %v827_v7  ;;  %v865_v5 = vadd.f32 %v4261_v40, %v825_v13  ;;  %v787_v9 = vmul.f32 %v3318_v2, %v4179_v48 }
 0x1f8   : > { %v890_v19 = vpack.c.bf16 %v868_v39, %v866_v62  ;;  %v830_v1 = vmul.f32 %v4248_v34, %v788_v63  ;;  %v872_v30 = vadd.f32 %v4256_v6, %v832_v17  ;;  %v831_v22 = vmul.f32 %v4251_v33, %v789_v45 }
 0x1f9   : > { %1154 = vmatmul.mubr.bf16.gmra.mrb[8].mxu0 %v885_v56  ;;  %1471 = vmatmul.mubr.bf16.gmra.mrb[8].mxu1 %v885_v56  ;;  %v3320_v0 = vpop.eup %3319  ;;  %v889_v27 = vpack.c.bf16 %v867_v49, %v865_v5  ;;  %v829_v12 = vmul.f32 %v4251_v33, %v787_v9 }
 0x1fa   : > { %1163 = vmatprep.mubr.bf16.mxu0 %v888_v43  ;;  %1480 = vmatprep.mubr.bf16.mxu1 %v888_v43  ;;  %v3322_v59 = vpop.eup %3321  ;;  %v794_v35 = vmul.f32 %v3320_v0, %v4208_v10  ;;  %v870_v53 = vadd.f32 %v4256_v6, %v830_v1  ;;  %v871_v25 = vadd.f32 %v4261_v40, %v831_v22 }
 0x1fb   : > { %v792_v60 = vmul.f32 %v3322_v59, %v4202_v18  ;;  %v793_v18 = vmul.f32 %v3320_v0, %v4205_v21  ;;  %v869_v11 = vadd.f32 %v4261_v40, %v829_v12  ;;  %v791_v16 = vmul.f32 %v3322_v59, %v4199_v3 }
 0x1fc   : > { %v892_v37 = vpack.c.bf16 %v872_v30, %v870_v53  ;;  %v836_v38 = vmul.f32 %v4248_v34, %v794_v35 }
 0x1fd   : > { %v834_v10 = vmul.f32 %v4248_v34, %v792_v60  ;;  %v891_v14 = vpack.c.bf16 %v871_v25, %v869_v11  ;;  %v835_v56 = vmul.f32 %v4251_v33, %v793_v18  ;;  %v833_v21 = vmul.f32 %v4251_v33, %v791_v16 }
 0x1fe   : > { %v3324_v23 = vpop.eup %3323  ;;  %v876_v26 = vadd.f32 %v4256_v6, %v836_v38 }
 0x1ff   : > { %v3326_v48 = vpop.eup %3325  ;;  %v798_v42 = vmul.f32 %v3324_v23, %v4228_v50  ;;  %v874_v58 = vadd.f32 %v4256_v6, %v834_v10  ;;  %v875_v3 = vadd.f32 %v4261_v40, %v835_v56  ;;  %v797_v28 = vmul.f32 %v3324_v23, %v4225_v47 }
 0x200   : > { %v796_v51 = vmul.f32 %v3326_v48, %v4222_v8  ;;  %v873_v44 = vadd.f32 %v4261_v40, %v833_v21  ;;  %v795_v24 = vmul.f32 %v3326_v48, %v4219_v36  ;;  %v929_v36 = vld [vmem:[%s4976_s20] sm:$0x3]  ;;  %s2351_s20 = sshll.u32 %s4400_s5, 4  ;;  %s4828_s20 = int_to_ptr.vmem [resolvable:$true] %s2351_s20 }
 0x201   : > { %1164 = vmatmul.mubr.bf16.gmra.mrb[12].mxu0 %v887_v4  ;;  %1481 = vmatmul.mubr.bf16.gmra.mrb[12].mxu1 %v887_v4  ;;  %v894_v55 = vpack.c.bf16 %v876_v26, %v874_v58  ;;  %v840_v43 = vmul.f32 %v4248_v34, %v798_v42  ;;  %v839_v2 = vmul.f32 %v4251_v33, %v797_v28  ;;  %s3501_s29 = scalar_lea.vmem %s4828_s20, 2048 }
 0x202   : > { %1173 = vmatprep.mubr.bf16.mxu0 %v890_v19  ;;  %1490 = vmatprep.mubr.bf16.mxu1 %v890_v19  ;;  %v838_v50 = vmul.f32 %v4248_v34, %v796_v51  ;;  %v893_v57 = vpack.c.bf16 %v875_v3, %v873_v44  ;;  %v837_v34 = vmul.f32 %v4251_v33, %v795_v24  ;;  %p3502_p6 = scmp.ne.s32.totalorder %s4828_s20, %s3501_s29 }
 0x203   : > { %v880_v8 = vadd.f32 %v4256_v6, %v840_v43  ;;  %v879_v47 = vadd.f32 %v4261_v40, %v839_v2  ;;  %v4362_v33 = vrot.slane %v929_v36, %v4245_v20  ;;  %v4365_v39 = vrot.slane %v929_v36, %v4243_v32 }
 0x204   : > { %v878_v52 = vadd.f32 %v4256_v6, %v838_v50  ;;  %v877_v29 = vadd.f32 %v4261_v40, %v837_v34  ;;  %v1246_v6 = vld [vmem:[%s4977_s22] sm:$0x3]  ;;  %p3503_p10 = pnand %p3502_p6, %p3877_p5  ;;  %s3635_s22 = smov [#allocation12]  }
 0x205   : > { %v4368_v46 = vrot.slane %v1246_v6, %v4245_v20  ;;  %v4371_v31 = vrot.slane %v1246_v6, %v4243_v32  ;;  %s3505_s10 = sshll.u32 %s3635_s22, 4  ;;  %s3506_s10 = int_to_ptr.vmem [resolvable:$false] %s3505_s10 }
 0x206   : > { %v896_v15 = vpack.c.bf16 %v880_v8, %v878_v52  ;;  %v895_v54 = vpack.c.bf16 %v879_v47, %v877_v29  ;;  %p3504_p3 = pneg %p3503_p10  ;;  %s3507_s24 = scalar_lea.vmem %s3506_s10, 4096 }
 0x207   : > { %p3508_p7 = scmp.lt.s32.totalorder %s4828_s20, %s3506_s10  ;;  %p3509_p9 = scmp.lt.s32.totalorder %s3507_s24, %s3501_s29 }
 0x209   : > { %1174 = vmatmul.mubr.bf16.gmra.mrb[16].mxu0 %v889_v27  ;;  %1491 = vmatmul.mubr.bf16.gmra.mrb[16].mxu1 %v889_v27  ;;  %p3510_p0 = por %p3509_p9, %p3508_p7 }
 0x20a   : > { %1183 = vmatprep.mubr.bf16.mxu0 %v892_v37  ;;  %1500 = vmatprep.mubr.bf16.mxu1 %v892_v37 }
 0x20b   : > { %p3511_p4 = pnand %p3510_p0, %p3504_p3 }
 0x211   : > { %1184 = vmatmul.mubr.bf16.gmra.mrb[20].mxu0 %v891_v14  ;;  %1501 = vmatmul.mubr.bf16.gmra.mrb[20].mxu1 %v891_v14 }
 0x212   : > { %1193 = vmatprep.mubr.bf16.mxu0 %v894_v55  ;;  %1510 = vmatprep.mubr.bf16.mxu1 %v894_v55 }
 0x219   : > { %1194 = vmatmul.mubr.bf16.gmra.mrb[24].mxu0 %v893_v57  ;;  %1511 = vmatmul.mubr.bf16.gmra.mrb[24].mxu1 %v893_v57 }
 0x21a   : > { %1203 = vmatprep.mubr.bf16.mxu0 %v896_v15  ;;  %1520 = vmatprep.mubr.bf16.mxu1 %v896_v15 }
 0x221   : > { %1204 = vmatmul.mubr.bf16.gmra.mrb[28].mxu0 %v895_v54  ;;  %1521 = vmatmul.mubr.bf16.gmra.mrb[28].mxu1 %v895_v54 }
 0x2bc   : > { %v1135_v40 = vpop.f32.mrb[0].mxu0  ;;  %v1452_v61 = vpop.f32.mrb[0].mxu1 }
 0x2bd   : > { %v4374_v41 = vadd.f32 %v1135_v40, %v4362_v33  ;;  %v1137_v62 = vpop.f32.mrb[1].mxu0  ;;  %v1454_v63 = vpop.f32.mrb[1].mxu1  ;;  %v1453_v0 = vadd.f32 %v1452_v61, %v4368_v46 }
 0x2be   : > { %v4378_v4 = vadd.f32 %v1137_v62, %v4365_v39  ;;  %v1139_v7 = vpop.f32.mrb[2].mxu0  ;;  %v1456_v19 = vpop.f32.mrb[2].mxu1  ;;  %v1455_v30 = vadd.f32 %v1454_v63, %v4371_v31 }
 0x2bf   : > { %v1532_v17 = vmul.f32 %v4374_v41, %v4374_v41  ;;  %v4384_v13 = vadd.f32 %v1139_v7, %v4362_v33  ;;  %v1457_v1 = vadd.f32 %v1456_v19, %v4368_v46  ;;  %v1141_v59 = vpop.f32.mrb[3].mxu0  ;;  %v1458_v49 = vpop.f32.mrb[3].mxu1 }
 0x2c0   : > { %v1533_v45 = vmul.f32 %v4378_v4, %v4378_v4  ;;  %v4391_v35 = vadd.f32 %v1141_v59, %v4365_v39  ;;  %v1459_v5 = vadd.f32 %v1458_v49, %v4371_v31 }
 0x2c1   : > { %v1534_v9 = vmul.f32 %v4384_v13, %v4384_v13  ;;  %v2826_v53 = vpack.c.bf16 %v1457_v1, %v1453_v0 }
 0x2c2   : > { %v1535_v60 = vmul.f32 %v4391_v35, %v4391_v35  ;;  %v2906_v27 = vpack.c.bf16 %v1459_v5, %v1455_v30  ;;  %v1564_v22 = vadd.f32 %v1533_v45, %v1532_v17 }
 0x2c3   : > { %2827 = vst [vmem:[%s4400_s5] sm:$0xff] %v2826_v53  }
 0x2c4   : > { %2965 = vst [vmem:[%s4400_s5 + $0x40] sm:$0xff] %v2906_v27   ;;  %v1145_v37 = vpop.f32.mrb[4].mxu0  ;;  %v1462_v38 = vpop.f32.mrb[4].mxu1  ;;  %1565 = vadd.xlane.f32.xlu0 %v1564_v22  ;;  %v1567_v23 = vadd.f32 %v1535_v60, %v1534_v9 }
 0x2c5   : > { %v4405_v12 = vadd.f32 %v1145_v37, %v4362_v33  ;;  %v1147_v10 = vpop.f32.mrb[5].mxu0  ;;  %v1464_v48 = vpop.f32.mrb[5].mxu1  ;;  %v1463_v11 = vadd.f32 %v1462_v38, %v4368_v46 }
 0x2c6   : > { %v4408_v25 = vadd.f32 %v1147_v10, %v4365_v39  ;;  %v1149_v18 = vpop.f32.mrb[6].mxu0  ;;  %v1466_v26 = vpop.f32.mrb[6].mxu1  ;;  %1568 = vadd.xlane.f32.xlu1 %v1567_v23  ;;  %v1465_v55 = vadd.f32 %v1464_v48, %v4371_v31 }
 0x2c7   : > { %v1536_v42 = vmul.f32 %v4405_v12, %v4405_v12  ;;  %v4414_v16 = vadd.f32 %v1149_v18, %v4362_v33  ;;  %v1467_v58 = vadd.f32 %v1466_v26, %v4368_v46  ;;  %v1151_v51 = vpop.f32.mrb[7].mxu0  ;;  %v1468_v14 = vpop.f32.mrb[7].mxu1 }
 0x2c8   : > { %v1537_v56 = vmul.f32 %v4408_v25, %v4408_v25  ;;  %v4421_v43 = vadd.f32 %v1151_v51, %v4365_v39  ;;  %v1469_v21 = vadd.f32 %v1468_v14, %v4371_v31 }
 0x2c9   : > { %v1538_v50 = vmul.f32 %v4414_v16, %v4414_v16  ;;  %v2831_v3 = vpack.c.bf16 %v1467_v58, %v1463_v11 }
 0x2ca   : > { %v1539_v28 = vmul.f32 %v4421_v43, %v4421_v43  ;;  %v2911_v8 = vpack.c.bf16 %v1469_v21, %v1465_v55  ;;  %v1570_v44 = vadd.f32 %v1537_v56, %v1536_v42 }
 0x2cb   : > { %2950 = vst [vmem:[%s4400_s5 + $0x8] sm:$0xff] %v2831_v3  }
 0x2cc   : > { %2966 = vst [vmem:[%s4400_s5 + $0x48] sm:$0xff] %v2911_v8   ;;  %v1155_v24 = vpop.f32.mrb[8].mxu0  ;;  %v1472_v52 = vpop.f32.mrb[8].mxu1  ;;  %1571 = vadd.xlane.f32.xlu0 %v1570_v44  ;;  %v1573_v57 = vadd.f32 %v1539_v28, %v1538_v50 }
 0x2cd   : > { %v4431_v2 = vadd.f32 %v1155_v24, %v4362_v33  ;;  %v1157_v15 = vpop.f32.mrb[9].mxu0  ;;  %v1474_v34 = vpop.f32.mrb[9].mxu1  ;;  %v1473_v6 = vadd.f32 %v1472_v52, %v4368_v46 }
 0x2ce   : > { %v4434_v47 = vadd.f32 %v1157_v15, %v4365_v39  ;;  %v1159_v29 = vpop.f32.mrb[10].mxu0  ;;  %v1476_v54 = vpop.f32.mrb[10].mxu1  ;;  %1574 = vadd.xlane.f32.xlu1 %v1573_v57  ;;  %v1475_v19 = vadd.f32 %v1474_v34, %v4371_v31 }
 0x2cf   : > { %v1540_v36 = vmul.f32 %v4431_v2, %v4431_v2  ;;  %v4440_v40 = vadd.f32 %v1159_v29, %v4362_v33  ;;  %v1477_v61 = vadd.f32 %v1476_v54, %v4368_v46  ;;  %v1161_v62 = vpop.f32.mrb[11].mxu0  ;;  %v1478_v63 = vpop.f32.mrb[11].mxu1 }
 0x2d0   : > { %v1541_v7 = vmul.f32 %v4434_v47, %v4434_v47  ;;  %v4447_v17 = vadd.f32 %v1161_v62, %v4365_v39  ;;  %v1479_v0 = vadd.f32 %v1478_v63, %v4371_v31 }
 0x2d1   : > { %v1542_v1 = vmul.f32 %v4440_v40, %v4440_v40  ;;  %v2836_v59 = vpack.c.bf16 %v1477_v61, %v1473_v6 }
 0x2d2   : > { %v1543_v49 = vmul.f32 %v4447_v17, %v4447_v17  ;;  %v2916_v45 = vpack.c.bf16 %v1479_v0, %v1475_v19  ;;  %v1576_v30 = vadd.f32 %v1541_v7, %v1540_v36 }
 0x2d3   : > { %2951 = vst [vmem:[%s4400_s5 + $0x10] sm:$0xff] %v2836_v59  }
 0x2d4   : > { %2967 = vst [vmem:[%s4400_s5 + $0x50] sm:$0xff] %v2916_v45   ;;  %v1165_v5 = vpop.f32.mrb[12].mxu0  ;;  %v1482_v9 = vpop.f32.mrb[12].mxu1  ;;  %1577 = vadd.xlane.f32.xlu0 %v1576_v30  ;;  %v1579_v53 = vadd.f32 %v1543_v49, %v1542_v1 }
 0x2d5   : > { %v4457_v60 = vadd.f32 %v1165_v5, %v4362_v33  ;;  %v1167_v27 = vpop.f32.mrb[13].mxu0  ;;  %v1484_v22 = vpop.f32.mrb[13].mxu1  ;;  %v1483_v48 = vadd.f32 %v1482_v9, %v4368_v46 }
 0x2d6   : > { %v4460_v37 = vadd.f32 %v1167_v27, %v4365_v39  ;;  %v1169_v38 = vpop.f32.mrb[14].mxu0  ;;  %v1486_v23 = vpop.f32.mrb[14].mxu1  ;;  %1580 = vadd.xlane.f32.xlu1 %v1579_v53  ;;  %v1485_v51 = vadd.f32 %v1484_v22, %v4371_v31 }
 0x2d7   : > { %v1544_v10 = vmul.f32 %v4457_v60, %v4457_v60  ;;  %v4466_v18 = vadd.f32 %v1169_v38, %v4362_v33  ;;  %v1487_v26 = vadd.f32 %v1486_v23, %v4368_v46  ;;  %v1171_v42 = vpop.f32.mrb[15].mxu0  ;;  %v1488_v11 = vpop.f32.mrb[15].mxu1 }
 0x2d8   : > { %v1545_v58 = vmul.f32 %v4460_v37, %v4460_v37  ;;  %v4473_v14 = vadd.f32 %v1171_v42, %v4365_v39  ;;  %v1489_v56 = vadd.f32 %v1488_v11, %v4371_v31 }
 0x2d9   : > { %v1546_v55 = vmul.f32 %v4466_v18, %v4466_v18  ;;  %v2841_v21 = vpack.c.bf16 %v1487_v26, %v1483_v48 }
 0x2da   : > { %v1547_v50 = vmul.f32 %v4473_v14, %v4473_v14  ;;  %v2921_v3 = vpack.c.bf16 %v1489_v56, %v1485_v51  ;;  %v1582_v28 = vadd.f32 %v1545_v58, %v1544_v10 }
 0x2db   : > { %2952 = vst [vmem:[%s4400_s5 + $0x18] sm:$0xff] %v2841_v21  }
 0x2dc   : > { %2968 = vst [vmem:[%s4400_s5 + $0x58] sm:$0xff] %v2921_v3   ;;  %v1175_v8 = vpop.f32.mrb[16].mxu0  ;;  %v1492_v44 = vpop.f32.mrb[16].mxu1  ;;  %1583 = vadd.xlane.f32.xlu0 %v1582_v28  ;;  %v1585_v24 = vadd.f32 %v1547_v50, %v1546_v55 }
 0x2dd   : > { %v4483_v52 = vadd.f32 %v1175_v8, %v4362_v33  ;;  %v1177_v57 = vpop.f32.mrb[17].mxu0  ;;  %v1494_v15 = vpop.f32.mrb[17].mxu1  ;;  %v1493_v6 = vadd.f32 %v1492_v44, %v4368_v46 }
 0x2de   : > { %v4486_v34 = vadd.f32 %v1177_v57, %v4365_v39  ;;  %v1179_v29 = vpop.f32.mrb[18].mxu0  ;;  %v1496_v54 = vpop.f32.mrb[18].mxu1  ;;  %1586 = vadd.xlane.f32.xlu1 %v1585_v24  ;;  %v1495_v0 = vadd.f32 %v1494_v15, %v4371_v31 }
 0x2df   : > { %v1548_v36 = vmul.f32 %v4483_v52, %v4483_v52  ;;  %v4492_v61 = vadd.f32 %v1179_v29, %v4362_v33  ;;  %v1497_v62 = vadd.f32 %v1496_v54, %v4368_v46  ;;  %v1181_v63 = vpop.f32.mrb[19].mxu0  ;;  %v1498_v7 = vpop.f32.mrb[19].mxu1 }
 0x2e0   : > { %v1549_v19 = vmul.f32 %v4486_v34, %v4486_v34  ;;  %v4499_v1 = vadd.f32 %v1181_v63, %v4365_v39  ;;  %v1499_v59 = vadd.f32 %v1498_v7, %v4371_v31 }
 0x2e1   : > { %v1550_v49 = vmul.f32 %v4492_v61, %v4492_v61  ;;  %v2846_v45 = vpack.c.bf16 %v1497_v62, %v1493_v6 }
 0x2e2   : > { %v1551_v30 = vmul.f32 %v4499_v1, %v4499_v1  ;;  %v2926_v5 = vpack.c.bf16 %v1499_v59, %v1495_v0  ;;  %v1588_v9 = vadd.f32 %v1549_v19, %v1548_v36 }
 0x2e3   : > { %2953 = vst [vmem:[%s4400_s5 + $0x20] sm:$0xff] %v2846_v45  }
 0x2e4   : > { %2969 = vst [vmem:[%s4400_s5 + $0x60] sm:$0xff] %v2926_v5   ;;  %v1185_v53 = vpop.f32.mrb[20].mxu0  ;;  %v1502_v27 = vpop.f32.mrb[20].mxu1  ;;  %1589 = vadd.xlane.f32.xlu0 %v1588_v9  ;;  %v1591_v22 = vadd.f32 %v1551_v30, %v1550_v49 }
 0x2e5   : > { %v4509_v38 = vadd.f32 %v1185_v53, %v4362_v33  ;;  %v1187_v23 = vpop.f32.mrb[21].mxu0  ;;  %v1504_v10 = vpop.f32.mrb[21].mxu1  ;;  %v1503_v58 = vadd.f32 %v1502_v27, %v4368_v46 }
 0x2e6   : > { %v4512_v48 = vadd.f32 %v1187_v23, %v4365_v39  ;;  %v1189_v26 = vpop.f32.mrb[22].mxu0  ;;  %v1506_v42 = vpop.f32.mrb[22].mxu1  ;;  %1592 = vadd.xlane.f32.xlu1 %v1591_v22  ;;  %v1505_v3 = vadd.f32 %v1504_v10, %v4371_v31 }
 0x2e7   : > { %v1552_v11 = vmul.f32 %v4509_v38, %v4509_v38  ;;  %v4518_v51 = vadd.f32 %v1189_v26, %v4362_v33  ;;  %v1507_v56 = vadd.f32 %v1506_v42, %v4368_v46  ;;  %v1191_v55 = vpop.f32.mrb[23].mxu0  ;;  %v1508_v21 = vpop.f32.mrb[23].mxu1 }
 0x2e8   : > { %v1553_v50 = vmul.f32 %v4512_v48, %v4512_v48  ;;  %v4525_v28 = vadd.f32 %v1191_v55, %v4365_v39  ;;  %v1509_v8 = vadd.f32 %v1508_v21, %v4371_v31 }
 0x2e9   : > { %v1554_v44 = vmul.f32 %v4518_v51, %v4518_v51  ;;  %v2851_v24 = vpack.c.bf16 %v1507_v56, %v1503_v58 }
 0x2ea   : > { %v1555_v57 = vmul.f32 %v4525_v28, %v4525_v28  ;;  %v2931_v15 = vpack.c.bf16 %v1509_v8, %v1505_v3  ;;  %v1594_v29 = vadd.f32 %v1553_v50, %v1552_v11 }
 0x2eb   : > { %2954 = vst [vmem:[%s4400_s5 + $0x28] sm:$0xff] %v2851_v24  }
 0x2ec   : > { %2970 = vst [vmem:[%s4400_s5 + $0x68] sm:$0xff] %v2931_v15   ;;  %v1195_v54 = vpop.f32.mrb[24].mxu0  ;;  %v1512_v36 = vpop.f32.mrb[24].mxu1  ;;  %1595 = vadd.xlane.f32.xlu0 %v1594_v29  ;;  %v1597_v6 = vadd.f32 %v1555_v57, %v1554_v44 }
 0x2ed   : > { %v4535_v62 = vadd.f32 %v1195_v54, %v4362_v33  ;;  %v1197_v63 = vpop.f32.mrb[25].mxu0  ;;  %v1514_v7 = vpop.f32.mrb[25].mxu1  ;;  %v1513_v45 = vadd.f32 %v1512_v36, %v4368_v46 }
 0x2ee   : > { %v4538_v19 = vadd.f32 %v1197_v63, %v4365_v39  ;;  %v1199_v0 = vpop.f32.mrb[26].mxu0  ;;  %v1516_v59 = vpop.f32.mrb[26].mxu1  ;;  %1598 = vadd.xlane.f32.xlu1 %v1597_v6  ;;  %v1515_v22 = vadd.f32 %v1514_v7, %v4371_v31 }
 0x2ef   : > { %v1556_v49 = vmul.f32 %v4535_v62, %v4535_v62  ;;  %v4544_v30 = vadd.f32 %v1199_v0, %v4362_v33  ;;  %v1517_v5 = vadd.f32 %v1516_v59, %v4368_v46  ;;  %v1201_v9 = vpop.f32.mrb[27].mxu0  ;;  %v1518_v53 = vpop.f32.mrb[27].mxu1 }
 0x2f0   : > { %v1557_v27 = vmul.f32 %v4538_v19, %v4538_v19  ;;  %v4551_v23 = vadd.f32 %v1201_v9, %v4365_v39  ;;  %v1519_v10 = vadd.f32 %v1518_v53, %v4371_v31 }
 0x2f1   : > { %v1558_v26 = vmul.f32 %v4544_v30, %v4544_v30  ;;  %v2856_v42 = vpack.c.bf16 %v1517_v5, %v1513_v45 }
 0x2f2   : > { %v1559_v11 = vmul.f32 %v4551_v23, %v4551_v23  ;;  %v2936_v58 = vpack.c.bf16 %v1519_v10, %v1515_v22  ;;  %v1600_v56 = vadd.f32 %v1557_v27, %v1556_v49 }
 0x2f3   : > { %2955 = vst [vmem:[%s4400_s5 + $0x30] sm:$0xff] %v2856_v42  }
 0x2f4   : > { %2971 = vst [vmem:[%s4400_s5 + $0x70] sm:$0xff] %v2936_v58   ;;  %v1205_v55 = vpop.f32.mrb[28].mxu0  ;;  %v1522_v21 = vpop.f32.mrb[28].mxu1  ;;  %1601 = vadd.xlane.f32.xlu0 %v1600_v56  ;;  %v1603_v50 = vadd.f32 %v1559_v11, %v1558_v26 }
 0x2f5   : > { %v4561_v3 = vadd.f32 %v1205_v55, %v4362_v33  ;;  %v1207_v8 = vpop.f32.mrb[29].mxu0  ;;  %v1524_v44 = vpop.f32.mrb[29].mxu1  ;;  %v1523_v54 = vadd.f32 %v1522_v21, %v4368_v46 }
 0x2f6   : > { %v4564_v24 = vadd.f32 %v1207_v8, %v4365_v39  ;;  %v1209_v57 = vpop.f32.mrb[30].mxu0  ;;  %v1526_v15 = vpop.f32.mrb[30].mxu1  ;;  %1604 = vadd.xlane.f32.xlu1 %v1603_v50  ;;  %v1525_v59 = vadd.f32 %v1524_v44, %v4371_v31  ;;  %v1531_v50 = vld [vmem:[%s4978_s19] sm:$0x3] }
 0x2f7   : > { %v1560_v29 = vmul.f32 %v4561_v3, %v4561_v3  ;;  %v4570_v36 = vadd.f32 %v1209_v57, %v4362_v33  ;;  %v1527_v6 = vadd.f32 %v1526_v15, %v4368_v46  ;;  %v1211_v63 = vpop.f32.mrb[31].mxu0  ;;  %v1528_v7 = vpop.f32.mrb[31].mxu1  ;;  %v4590_v44 = vrot.slane %v1531_v50, %v4243_v32 }
 0x2f8   : > { %v1561_v0 = vmul.f32 %v4564_v24, %v4564_v24  ;;  %v4577_v49 = vadd.f32 %v1211_v63, %v4365_v39  ;;  %v1529_v45 = vadd.f32 %v1528_v7, %v4371_v31  ;;  %v4593_v57 = vrot.slane %v1531_v50, %v4245_v20 }
 0x2f9   : > { %v1562_v5 = vmul.f32 %v4570_v36, %v4570_v36  ;;  %v2861_v9 = vpack.c.bf16 %v1527_v6, %v1523_v54 }
 0x2fa   : > { %v1563_v33 = vmul.f32 %v4577_v49, %v4577_v49  ;;  %v2941_v46 = vpack.c.bf16 %v1529_v45, %v1525_v59  ;;  %v1606_v53 = vadd.f32 %v1561_v0, %v1560_v29 }
 0x2fb   : > { %2956 = vst [vmem:[%s4400_s5 + $0x38] sm:$0xff] %v2861_v9  }
 0x2fc   : > { %2972 = vst [vmem:[%s4400_s5 + $0x78] sm:$0xff] %v2941_v46   ;;  %1607 = vadd.xlane.f32.xlu0 %v1606_v53  ;;  %v1609_v27 = vadd.f32 %v1563_v33, %v1562_v5 }
 0x2fe   : > { %1610 = vadd.xlane.f32.xlu1 %v1609_v27 }
 0x351   : > { %v1566_v22 = vpop.xlane.xlu0 %1565 }
 0x352   : > { %v1612_v10 = vmul.f32 0.00390625, %v1566_v22 }
 0x353   : > { %v1569_v39 = vpop.xlane.xlu1 %1568 }
 0x354   : > { %v1628_v26 = vadd.f32 1e-06, %v1612_v10  ;;  %v1613_v42 = vmul.f32 0.00390625, %v1569_v39 }
 0x356   : > { %3327 = vrsqrt.f32 %v1628_v26  ;;  %v1629_v31 = vadd.f32 1e-06, %v1613_v42 }
 0x358   : > { %3329 = vrsqrt.f32 %v1629_v31 }
 0x359   : > { %v1572_v11 = vpop.xlane.xlu0 %1571 }
 0x35a   : > { %v1614_v58 = vmul.f32 0.00390625, %v1572_v11 }
 0x35b   : > { %v1575_v56 = vpop.xlane.xlu1 %1574 }
 0x35c   : > { %v1630_v55 = vadd.f32 1e-06, %v1614_v58  ;;  %v1615_v21 = vmul.f32 0.00390625, %v1575_v56 }
 0x35e   : > { %3331 = vrsqrt.f32 %v1630_v55  ;;  %v1631_v8 = vadd.f32 1e-06, %v1615_v21 }
 0x360   : > { %v3328_v15 = vpop.eup %3327  ;;  %3333 = vrsqrt.f32 %v1631_v8 }
 0x361   : > { %v1578_v29 = vpop.xlane.xlu0 %1577  ;;  %v1661_v54 = vmul.f32 %v3328_v15, %v4378_v4  ;;  %v1660_v6 = vmul.f32 %v3328_v15, %v4374_v41 }
 0x362   : > { %v3330_v63 = vpop.eup %3329  ;;  %v1616_v7 = vmul.f32 0.00390625, %v1578_v29 }
 0x363   : > { %v1581_v0 = vpop.xlane.xlu1 %1580  ;;  %v4598_v59 = vmul.f32 %v4590_v44, %v1661_v54  ;;  %v4601_v45 = vmul.f32 %v4593_v57, %v1660_v6  ;;  %v1662_v32 = vmul.f32 %v3330_v63, %v4384_v13  ;;  %v1663_v20 = vmul.f32 %v3330_v63, %v4391_v35 }
 0x364   : > { %v1632_v5 = vadd.f32 1e-06, %v1616_v7  ;;  %v1617_v9 = vmul.f32 0.00390625, %v1581_v0 }
 0x365   : > { %2055 = vrot.lane.b32.xlu1 %v4598_v59, %s3634_s21  ;;  %1783 = vrot.lane.b32.xlu0 %v4601_v45, %s3634_s21  ;;  %v4610_v4 = vmul.f32 %v4593_v57, %v1662_v32  ;;  %v4613_v33 = vmul.f32 %v4590_v44, %v1663_v20 }
 0x366   : > { %3335 = vrsqrt.f32 %v1632_v5  ;;  %v1633_v41 = vadd.f32 1e-06, %v1617_v9 }
 0x368   : > { %v3332_v13 = vpop.eup %3331  ;;  %3337 = vrsqrt.f32 %v1633_v41 }
 0x369   : > { %1785 = vrot.lane.b32.xlu1 %v4610_v4, %s3634_s21  ;;  %2057 = vrot.lane.b32.xlu0 %v4613_v33, %s3634_s21  ;;  %v1584_v35 = vpop.xlane.xlu0 %1583  ;;  %v1664_v46 = vmul.f32 %v3332_v13, %v4405_v12  ;;  %v1665_v26 = vmul.f32 %v3332_v13, %v4408_v25 }
 0x36a   : > { %v3334_v53 = vpop.eup %3333  ;;  %v1618_v27 = vmul.f32 0.00390625, %v1584_v35 }
 0x36b   : > { %v1587_v22 = vpop.xlane.xlu1 %1586  ;;  %v4621_v10 = vmul.f32 %v4593_v57, %v1664_v46  ;;  %v1667_v39 = vmul.f32 %v3334_v53, %v4421_v43  ;;  %v4633_v58 = vmul.f32 %v4590_v44, %v1665_v26  ;;  %v1666_v43 = vmul.f32 %v3334_v53, %v4414_v16 }
 0x36c   : > { %v1634_v42 = vadd.f32 1e-06, %v1618_v27  ;;  %v1619_v31 = vmul.f32 0.00390625, %v1587_v22 }
 0x36d   : > { %1787 = vrot.lane.b32.xlu1 %v4621_v10, %s3634_s21  ;;  %v4628_v11 = vmul.f32 %v4590_v44, %v1667_v39  ;;  %v4640_v15 = vmul.f32 %v4593_v57, %v1666_v43 }
 0x36e   : > { %3339 = vrsqrt.f32 %v1634_v42  ;;  %v1635_v12 = vadd.f32 1e-06, %v1619_v31 }
 0x36f   : > { %2061 = vrot.lane.b32.xlu0 %v4628_v11, %s3634_s21 }
 0x370   : > { %v3336_v56 = vpop.eup %3335  ;;  %3341 = vrsqrt.f32 %v1635_v12 }
 0x371   : > { %2059 = vrot.lane.b32.xlu1 %v4633_v58, %s3634_s21  ;;  %v1590_v25 = vpop.xlane.xlu0 %1589  ;;  %v1668_v55 = vmul.f32 %v3336_v56, %v4431_v2  ;;  %v1669_v54 = vmul.f32 %v3336_v56, %v4434_v47 }
 0x372   : > { %v3338_v21 = vpop.eup %3337  ;;  %v1620_v50 = vmul.f32 0.00390625, %v1590_v25 }
 0x373   : > { %v1593_v8 = vpop.xlane.xlu1 %1592  ;;  %v4643_v29 = vmul.f32 %v4593_v57, %v1668_v55  ;;  %v1671_v16 = vmul.f32 %v3338_v21, %v4447_v17  ;;  %v4652_v7 = vmul.f32 %v4590_v44, %v1669_v54  ;;  %v1670_v47 = vmul.f32 %v3338_v21, %v4440_v40 }
 0x374   : > { %v1636_v6 = vadd.f32 1e-06, %v1620_v50  ;;  %v1621_v63 = vmul.f32 0.00390625, %v1593_v8 }
 0x375   : > { %1789 = vrot.lane.b32.xlu1 %v4640_v15, %s3634_s21  ;;  %1791 = vrot.lane.b32.xlu0 %v4643_v29, %s3634_s21  ;;  %v4655_v0 = vmul.f32 %v4590_v44, %v1671_v16  ;;  %v4664_v13 = vmul.f32 %v4593_v57, %v1670_v47 }
 0x376   : > { %3343 = vrsqrt.f32 %v1636_v6  ;;  %v1637_v2 = vadd.f32 1e-06, %v1621_v63 }
 0x378   : > { %v3340_v32 = vpop.eup %3339  ;;  %3345 = vrsqrt.f32 %v1637_v2 }
 0x379   : > { %2063 = vrot.lane.b32.xlu1 %v4652_v7, %s3634_s21  ;;  %2065 = vrot.lane.b32.xlu0 %v4655_v0, %s3634_s21  ;;  %v1596_v17 = vpop.xlane.xlu0 %1595  ;;  %v1672_v20 = vmul.f32 %v3340_v32, %v4457_v60  ;;  %v1673_v40 = vmul.f32 %v3340_v32, %v4460_v37 }
 0x37a   : > { %v3342_v5 = vpop.eup %3341  ;;  %v1622_v9 = vmul.f32 0.00390625, %v1596_v17 }
 0x37b   : > { %v1599_v41 = vpop.xlane.xlu1 %1598  ;;  %v4667_v35 = vmul.f32 %v4593_v57, %v1672_v20  ;;  %v1674_v46 = vmul.f32 %v3342_v5, %v4466_v18  ;;  %v4676_v22 = vmul.f32 %v4590_v44, %v1673_v40  ;;  %v1675_v37 = vmul.f32 %v3342_v5, %v4473_v14 }
 0x37c   : > { %v1638_v53 = vadd.f32 1e-06, %v1622_v9  ;;  %v1623_v27 = vmul.f32 0.00390625, %v1599_v41 }
 0x37d   : > { %1793 = vrot.lane.b32.xlu1 %v4664_v13, %s3634_s21  ;;  %1795 = vrot.lane.b32.xlu0 %v4667_v35, %s3634_s21  ;;  %v4679_v39 = vmul.f32 %v4593_v57, %v1674_v46  ;;  %v4688_v56 = vmul.f32 %v4590_v44, %v1675_v37 }
 0x37e   : > { %3347 = vrsqrt.f32 %v1638_v53  ;;  %v1639_v60 = vadd.f32 1e-06, %v1623_v27 }
 0x380   : > { %v3344_v26 = vpop.eup %3343  ;;  %3349 = vrsqrt.f32 %v1639_v60 }
 0x381   : > { %2067 = vrot.lane.b32.xlu1 %v4676_v22, %s3634_s21  ;;  %1797 = vrot.lane.b32.xlu0 %v4679_v39, %s3634_s21  ;;  %v1602_v18 = vpop.xlane.xlu0 %1601  ;;  %v1676_v42 = vmul.f32 %v3344_v26, %v4483_v52  ;;  %v1677_v14 = vmul.f32 %v3344_v26, %v4486_v34 }
 0x382   : > { %v3346_v31 = vpop.eup %3345  ;;  %v1624_v12 = vmul.f32 0.00390625, %v1602_v18 }
 0x383   : > { %v1605_v43 = vpop.xlane.xlu1 %1604  ;;  %v4691_v25 = vmul.f32 %v4593_v57, %v1676_v42  ;;  %v1678_v55 = vmul.f32 %v3346_v31, %v4492_v61  ;;  %v4700_v8 = vmul.f32 %v4590_v44, %v1677_v14  ;;  %v1679_v34 = vmul.f32 %v3346_v31, %v4499_v1 }
 0x384   : > { %v1640_v21 = vadd.f32 1e-06, %v1624_v12  ;;  %v1625_v50 = vmul.f32 0.00390625, %v1605_v43 }
 0x385   : > { %2069 = vrot.lane.b32.xlu1 %v4688_v56, %s3634_s21  ;;  %1799 = vrot.lane.b32.xlu0 %v4691_v25, %s3634_s21  ;;  %v4703_v54 = vmul.f32 %v4593_v57, %v1678_v55  ;;  %v4712_v32 = vmul.f32 %v4590_v44, %v1679_v34 }
 0x386   : > { %3351 = vrsqrt.f32 %v1640_v21  ;;  %v1641_v52 = vadd.f32 1e-06, %v1625_v50  ;;  %v1751_v21 = vld [vmem:[#allocation7] sm:$0xff] }
 0x388   : > { %v3348_v16 = vpop.eup %3347  ;;  %3353 = vrsqrt.f32 %v1641_v52 }
 0x389   : > { %2071 = vrot.lane.b32.xlu1 %v4700_v8, %s3634_s21  ;;  %1801 = vrot.lane.b32.xlu0 %v4703_v54, %s3634_s21  ;;  %v1608_v61 = vpop.xlane.xlu0 %1607  ;;  %v1680_v6 = vmul.f32 %v3348_v16, %v4509_v38  ;;  %v1681_v1 = vmul.f32 %v3348_v16, %v4512_v48 }
 0x38a   : > { %v3350_v63 = vpop.eup %3349  ;;  %v1626_v2 = vmul.f32 0.00390625, %v1608_v61  ;;  %v1736_v61 = vld [vmem:[#allocation5 + $0x8] sm:$0xff] }
 0x38b   : > { %v1611_v47 = vpop.xlane.xlu1 %1610  ;;  %v4715_v17 = vmul.f32 %v4593_v57, %v1680_v6  ;;  %v1682_v20 = vmul.f32 %v3350_v63, %v4518_v51  ;;  %v4724_v41 = vmul.f32 %v4590_v44, %v1681_v1  ;;  %v1683_v48 = vmul.f32 %v3350_v63, %v4525_v28  ;;  %v1752_v6 = vld [vmem:[#allocation7 + $0x8] sm:$0xff] }
 0x38c   : > { %v1642_v5 = vadd.f32 1e-06, %v1626_v2  ;;  %v1627_v9 = vmul.f32 0.00390625, %v1611_v47 }
 0x38d   : > { %2073 = vrot.lane.b32.xlu1 %v4712_v32, %s3634_s21  ;;  %1803 = vrot.lane.b32.xlu0 %v4715_v17, %s3634_s21  ;;  %v4727_v40 = vmul.f32 %v4593_v57, %v1682_v20  ;;  %v4736_v27 = vmul.f32 %v4590_v44, %v1683_v48 }
 0x38e   : > { %3355 = vrsqrt.f32 %v1642_v5  ;;  %v1643_v38 = vadd.f32 1e-06, %v1627_v9  ;;  %v2040_v5 = vmul.f32 %v1736_v61, %v4613_v33  ;;  %v1738_v33 = vld [vmem:[#allocation5 + $0x18] sm:$0xff] }
 0x390   : > { %v3352_v46 = vpop.eup %3351  ;;  %3357 = vrsqrt.f32 %v1643_v38 }
 0x391   : > { %2075 = vrot.lane.b32.xlu1 %v4724_v41, %s3634_s21  ;;  %1805 = vrot.lane.b32.xlu0 %v4727_v40, %s3634_s21  ;;  %v1684_v51 = vmul.f32 %v3352_v46, %v4535_v62  ;;  %v1685_v37 = vmul.f32 %v3352_v46, %v4538_v19 }
 0x392   : > { %v3354_v53 = vpop.eup %3353 }
 0x393   : > { %v4739_v60 = vmul.f32 %v4593_v57, %v1684_v51  ;;  %v1686_v28 = vmul.f32 %v3354_v53, %v4544_v30  ;;  %v4748_v26 = vmul.f32 %v4590_v44, %v1685_v37  ;;  %v1687_v18 = vmul.f32 %v3354_v53, %v4551_v23  ;;  %v1737_v53 = vld [vmem:[#allocation5 + $0x10] sm:$0xff] }
 0x395   : > { %2077 = vrot.lane.b32.xlu1 %v4736_v27, %s3634_s21  ;;  %1807 = vrot.lane.b32.xlu0 %v4739_v60, %s3634_s21  ;;  %v4751_v62 = vmul.f32 %v4593_v57, %v1686_v28  ;;  %v4760_v31 = vmul.f32 %v4590_v44, %v1687_v18  ;;  %v1754_v28 = vld [vmem:[#allocation7 + $0x18] sm:$0xff] }
 0x398   : > { %v3356_v42 = vpop.eup %3355 }
 0x399   : > { %2079 = vrot.lane.b32.xlu1 %v4748_v26, %s3634_s21  ;;  %1809 = vrot.lane.b32.xlu0 %v4751_v62, %s3634_s21  ;;  %v1688_v19 = vmul.f32 %v3356_v42, %v4561_v3  ;;  %v1689_v43 = vmul.f32 %v3356_v42, %v4564_v24 }
 0x39a   : > { %v3358_v30 = vpop.eup %3357 }
 0x39b   : > { %v4763_v12 = vmul.f32 %v4593_v57, %v1688_v19  ;;  %v1690_v23 = vmul.f32 %v3358_v30, %v4570_v36  ;;  %v4772_v14 = vmul.f32 %v4590_v44, %v1689_v43  ;;  %v1691_v55 = vmul.f32 %v3358_v30, %v4577_v49  ;;  %v1735_v36 = vld [vmem:[#allocation5] sm:$0xff] }
 0x39c   : > { %v1767_v49 = vmul.f32 %v1735_v36, %v4601_v45  ;;  %v2041_v19 = vmul.f32 %v1737_v53, %v4633_v58 }
 0x39d   : > { %2081 = vrot.lane.b32.xlu1 %v4760_v31, %s3634_s21  ;;  %1811 = vrot.lane.b32.xlu0 %v4763_v12, %s3634_s21  ;;  %v4775_v3 = vmul.f32 %v4593_v57, %v1690_v23  ;;  %v4783_v24 = vmul.f32 %v4590_v44, %v1691_v55  ;;  %v2039_v57 = vmul.f32 %v1735_v36, %v4598_v59  ;;  %v1753_v59 = vld [vmem:[#allocation7 + $0x10] sm:$0xff] }
 0x39e   : > { %v1768_v44 = vmul.f32 %v1736_v61, %v4610_v4  ;;  %v1769_v4 = vmul.f32 %v1737_v53, %v4621_v10 }
 0x3a1   : > { %2083 = vrot.lane.b32.xlu1 %v4772_v14, %s3634_s21  ;;  %1813 = vrot.lane.b32.xlu0 %v4775_v3, %s3634_s21 }
 0x3a5   : > { %2085 = vrot.lane.b32.xlu1 %v4783_v24, %s3634_s21 }
 0x3d7   : > { %v2056_v50 = vpop.permute.xlu1 %2055  ;;  %v1784_v52 = vpop.permute.xlu0 %1783 }
 0x3d8   : > { %v2087_v34 = vmul.f32 %v2056_v50, %v1751_v21  ;;  %v1815_v16 = vmul.f32 %v1784_v52, %v1751_v21  ;;  %v1755_v21 = vld [vmem:[#allocation7 + $0x20] sm:$0xff]  ;;  %v2042_v52 = vmul.f32 %v1738_v33, %v4628_v11 }
 0x3da   : > { %v2103_v63 = vadd.f32 %v2087_v34, %v2039_v57  ;;  %v1831_v2 = vadd.f32 %v1815_v16, %v1767_v49  ;;  %v1770_v57 = vmul.f32 %v1738_v33, %v4640_v15  ;;  %v1739_v16 = vld [vmem:[#allocation5 + $0x20] sm:$0xff] }
 0x3db   : > { %v1786_v47 = vpop.permute.xlu1 %1785  ;;  %v2058_v1 = vpop.permute.xlu0 %2057 }
 0x3dc   : > { %v1816_v20 = vmul.f32 %v1786_v47, %v1752_v6  ;;  %v2088_v9 = vmul.f32 %v2058_v1, %v1752_v6  ;;  %v3087_v38 = vpack.i.bf16 %v2103_v63, %v1831_v2  ;;  %v1756_v63 = vld [vmem:[#allocation7 + $0x28] sm:$0xff]  ;;  %v2043_v47 = vmul.f32 %v1739_v16, %v4652_v7 }
 0x3de   : > { %v1832_v48 = vadd.f32 %v1816_v20, %v1768_v44  ;;  %v2104_v46 = vadd.f32 %v2088_v9, %v2040_v5  ;;  %3088 = vxpose.xlu0.b32.start [1/16] %v3087_v38, 128  ;;  %v1771_v44 = vmul.f32 %v1739_v16, %v4643_v29  ;;  %v1740_v5 = vld [vmem:[#allocation5 + $0x28] sm:$0xff]  ;;  %v1743_v16 = vld [vmem:[#allocation5 + $0x40] sm:$0xff] }
 0x3df   : > { %v1788_v51 = vpop.permute.xlu1 %1787 }
 0x3e0   : > { %v3089_v45 = vpack.i.bf16 %v2104_v46, %v1832_v48  ;;  %v1817_v37 = vmul.f32 %v1788_v51, %v1753_v59  ;;  %v1757_v48 = vld [vmem:[#allocation7 + $0x30] sm:$0xff]  ;;  %v1772_v51 = vmul.f32 %v1740_v5, %v4664_v13 }
 0x3e1   : > { %v2062_v18 = vpop.permute.xlu0 %2061 }
 0x3e2   : > { %3090 = vxpose.xlu0.b32.cont [2/16] %v3089_v45, 128  ;;  %v1833_v43 = vadd.f32 %v1817_v37, %v1769_v4  ;;  %v2090_v23 = vmul.f32 %v2062_v18, %v1754_v28  ;;  %v1741_v37 = vld [vmem:[#allocation5 + $0x30] sm:$0xff] }
 0x3e3   : > { %v2060_v42 = vpop.permute.xlu1 %2059 }
 0x3e4   : > { %v2089_v30 = vmul.f32 %v2060_v42, %v1753_v59  ;;  %v2106_v61 = vadd.f32 %v2090_v23, %v2042_v52  ;;  %v2044_v59 = vmul.f32 %v1740_v5, %v4655_v0  ;;  %v1758_v42 = vld [vmem:[#allocation7 + $0x38] sm:$0xff] }
 0x3e5   : > { %v1742_v23 = vld [vmem:[#allocation5 + $0x38] sm:$0xff] }
 0x3e6   : > { %v2105_v55 = vadd.f32 %v2089_v30, %v2041_v19  ;;  %v1773_v19 = vmul.f32 %v1741_v37, %v4667_v35  ;;  %v2045_v30 = vmul.f32 %v1741_v37, %v4676_v22  ;;  %v1774_v52 = vmul.f32 %v1742_v23, %v4679_v39 }
 0x3e7   : > { %v1790_v36 = vpop.permute.xlu1 %1789  ;;  %v1792_v50 = vpop.permute.xlu0 %1791 }
 0x3e8   : > { %v1818_v34 = vmul.f32 %v1790_v36, %v1754_v28  ;;  %v3091_v49 = vpack.i.bf16 %v2105_v55, %v1833_v43  ;;  %v1819_v10 = vmul.f32 %v1792_v50, %v1755_v21 }
 0x3ea   : > { %v1834_v6 = vadd.f32 %v1818_v34, %v1770_v57  ;;  %3092 = vxpose.xlu0.b32.cont [3/16] %v3091_v49, 128  ;;  %v1835_v11 = vadd.f32 %v1819_v10, %v1771_v44  ;;  %v2046_v57 = vmul.f32 %v1742_v23, %v4688_v56  ;;  %v1760_v10 = vld [vmem:[#allocation7 + $0x48] sm:$0xff] }
 0x3eb   : > { %v2064_v58 = vpop.permute.xlu1 %2063  ;;  %v2066_v2 = vpop.permute.xlu0 %2065 }
 0x3ec   : > { %v2091_v1 = vmul.f32 %v2064_v58, %v1755_v21  ;;  %v3093_v20 = vpack.i.bf16 %v2106_v61, %v1834_v6  ;;  %v2092_v15 = vmul.f32 %v2066_v2, %v1756_v63  ;;  %v1759_v21 = vld [vmem:[#allocation7 + $0x40] sm:$0xff]  ;;  %v2047_v2 = vmul.f32 %v1743_v16, %v4700_v8 }
 0x3ee   : > { %v2107_v9 = vadd.f32 %v2091_v1, %v2043_v47  ;;  %3094 = vxpose.xlu0.b32.cont [4/16] %v3093_v20, 128  ;;  %v2108_v29 = vadd.f32 %v2092_v15, %v2044_v59  ;;  %v1744_v1 = vld [vmem:[#allocation5 + $0x48] sm:$0xff]  ;;  %v1745_v59 = vld [vmem:[#allocation5 + $0x50] sm:$0xff] }
 0x3ef   : > { %v1794_v38 = vpop.permute.xlu1 %1793  ;;  %v1796_v46 = vpop.permute.xlu0 %1795  ;;  %v1776_v15 = vmul.f32 %v1744_v1, %v4703_v54 }
 0x3f0   : > { %v1820_v45 = vmul.f32 %v1794_v38, %v1756_v63  ;;  %v3095_v53 = vpack.i.bf16 %v2107_v9, %v1835_v11  ;;  %v1821_v7 = vmul.f32 %v1796_v46, %v1757_v48  ;;  %v1775_v63 = vmul.f32 %v1743_v16, %v4691_v25  ;;  %v1761_v11 = vld [vmem:[#allocation7 + $0x50] sm:$0xff] }
 0x3f1   : > { %v2048_v38 = vmul.f32 %v1744_v1, %v4712_v32 }
 0x3f2   : > { %v1836_v28 = vadd.f32 %v1820_v45, %v1772_v51  ;;  %3096 = vxpose.xlu0.b32.cont [5/16] %v3095_v53, 128  ;;  %v1837_v0 = vadd.f32 %v1821_v7, %v1773_v19  ;;  %v1762_v53 = vld [vmem:[#allocation7 + $0x58] sm:$0xff] }
 0x3f3   : > { %v2068_v18 = vpop.permute.xlu1 %2067  ;;  %v1798_v4 = vpop.permute.xlu0 %1797 }
 0x3f4   : > { %v2093_v33 = vmul.f32 %v2068_v18, %v1757_v48  ;;  %v3097_v43 = vpack.i.bf16 %v2108_v29, %v1836_v28  ;;  %v1822_v13 = vmul.f32 %v1798_v4, %v1758_v42  ;;  %v1777_v29 = vmul.f32 %v1745_v59, %v4715_v17 }
 0x3f5   : > { %v2049_v28 = vmul.f32 %v1745_v59, %v4724_v41 }
 0x3f6   : > { %v2109_v55 = vadd.f32 %v2093_v33, %v2045_v30  ;;  %3098 = vxpose.xlu0.b32.cont [6/16] %v3097_v43, 128  ;;  %v1838_v35 = vadd.f32 %v1822_v13, %v1774_v52  ;;  %v1763_v30 = vld [vmem:[#allocation7 + $0x60] sm:$0xff] }
 0x3f7   : > { %v2070_v36 = vpop.permute.xlu1 %2069  ;;  %v1800_v50 = vpop.permute.xlu0 %1799  ;;  %v1747_v13 = vld [vmem:[#allocation5 + $0x60] sm:$0xff] }
 0x3f8   : > { %v2094_v34 = vmul.f32 %v2070_v36, %v1758_v42  ;;  %v3099_v49 = vpack.i.bf16 %v2109_v55, %v1837_v0  ;;  %v1823_v22 = vmul.f32 %v1800_v50, %v1759_v21  ;;  %v1746_v42 = vld [vmem:[#allocation5 + $0x58] sm:$0xff]  ;;  %v1764_v50 = vld [vmem:[#allocation7 + $0x68] sm:$0xff] }
 0x3f9   : > { %v1778_v43 = vmul.f32 %v1746_v42, %v4727_v40  ;;  %v2050_v23 = vmul.f32 %v1746_v42, %v4736_v27 }
 0x3fa   : > { %v2110_v61 = vadd.f32 %v2094_v34, %v2046_v57  ;;  %3100 = vxpose.xlu0.b32.cont [7/16] %v3099_v49, 128  ;;  %v1839_v39 = vadd.f32 %v1823_v22, %v1775_v63  ;;  %v1779_v57 = vmul.f32 %v1747_v13, %v4739_v60  ;;  %v2051_v34 = vmul.f32 %v1747_v13, %v4748_v26 }
 0x3fb   : > { %v2072_v6 = vpop.permute.xlu1 %2071  ;;  %v1802_v58 = vpop.permute.xlu0 %1801 }
 0x3fc   : > { %v2095_v44 = vmul.f32 %v2072_v6, %v1759_v21  ;;  %v3101_v47 = vpack.i.bf16 %v2110_v61, %v1838_v35  ;;  %v1824_v56 = vmul.f32 %v1802_v58, %v1760_v10  ;;  %v1748_v35 = vld [vmem:[#allocation5 + $0x68] sm:$0xff]  ;;  %v1765_v6 = vld [vmem:[#allocation7 + $0x70] sm:$0xff] }
 0x3fd   : > { %v1780_v58 = vmul.f32 %v1748_v35, %v4751_v62  ;;  %v2052_v63 = vmul.f32 %v1748_v35, %v4760_v31  ;;  %v1750_v62 = vld [vmem:[#allocation5 + $0x78] sm:$0xff] }
 0x3fe   : > { %v2111_v20 = vadd.f32 %v2095_v44, %v2047_v2  ;;  %3102 = vxpose.xlu0.b32.cont [8/16] %v3101_v47, 128  ;;  %v1840_v25 = vadd.f32 %v1824_v56, %v1776_v15  ;;  %v1749_v47 = vld [vmem:[#allocation5 + $0x70] sm:$0xff]  ;;  %v1782_v59 = vmul.f32 %v1750_v62, %v4775_v3 }
 0x3ff   : > { %v2074_v5 = vpop.permute.xlu1 %2073  ;;  %v1804_v9 = vpop.permute.xlu0 %1803 }
 0x400   : > { %v2096_v48 = vmul.f32 %v2074_v5, %v1760_v10  ;;  %v3103_v46 = vpack.i.bf16 %v2111_v20, %v1839_v39  ;;  %v1825_v8 = vmul.f32 %v1804_v9, %v1761_v11  ;;  %v1766_v20 = vld [vmem:[#allocation7 + $0x78] sm:$0xff]  ;;  %v1781_v5 = vmul.f32 %v1749_v47, %v4763_v12 }
 0x402   : > { %v2112_v51 = vadd.f32 %v2096_v48, %v2048_v38  ;;  %3104 = vxpose.xlu0.b32.cont [9/16] %v3103_v46, 128  ;;  %v1841_v54 = vadd.f32 %v1825_v8, %v1777_v29 }
 0x403   : > { %v2076_v45 = vpop.permute.xlu1 %2075  ;;  %v1806_v37 = vpop.permute.xlu0 %1805 }
 0x404   : > { %v2097_v7 = vmul.f32 %v2076_v45, %v1761_v11  ;;  %v3105_v18 = vpack.i.bf16 %v2112_v51, %v1840_v25  ;;  %v1826_v32 = vmul.f32 %v1806_v37, %v1762_v53  ;;  %v2053_v11 = vmul.f32 %v1749_v47, %v4772_v14 }
 0x405   : > { %v2054_v25 = vmul.f32 %v1750_v62, %v4783_v24 }
 0x406   : > { %v2113_v4 = vadd.f32 %v2097_v7, %v2049_v28  ;;  %3106 = vxpose.xlu0.b32.cont [10/16] %v3105_v18, 128  ;;  %v1842_v17 = vadd.f32 %v1826_v32, %v1778_v43 }
 0x407   : > { %v2078_v19 = vpop.permute.xlu1 %2077  ;;  %v1808_v33 = vpop.permute.xlu0 %1807 }
 0x408   : > { %v2098_v0 = vmul.f32 %v2078_v19, %v1762_v53  ;;  %v3107_v55 = vpack.i.bf16 %v2113_v4, %v1841_v54  ;;  %v1827_v41 = vmul.f32 %v1808_v33, %v1763_v30 }
 0x40a   : > { %v2114_v36 = vadd.f32 %v2098_v0, %v2050_v23  ;;  %3108 = vxpose.xlu0.b32.cont [11/16] %v3107_v55, 128  ;;  %v1843_v40 = vadd.f32 %v1827_v41, %v1779_v57 }
 0x40b   : > { %v2080_v21 = vpop.permute.xlu1 %2079  ;;  %v1810_v52 = vpop.permute.xlu0 %1809 }
 0x40c   : > { %v2099_v49 = vmul.f32 %v2080_v21, %v1763_v30  ;;  %v3109_v16 = vpack.i.bf16 %v2114_v36, %v1842_v17  ;;  %v1828_v27 = vmul.f32 %v1810_v52, %v1764_v50 }
 0x40e   : > { %v2115_v61 = vadd.f32 %v2099_v49, %v2051_v34  ;;  %3110 = vxpose.xlu0.b32.cont [12/16] %v3109_v16, 128  ;;  %v1844_v60 = vadd.f32 %v1828_v27, %v1780_v58 }
 0x40f   : > { %v2082_v22 = vpop.permute.xlu1 %2081  ;;  %v1812_v10 = vpop.permute.xlu0 %1811 }
 0x410   : > { %v2100_v2 = vmul.f32 %v2082_v22, %v1764_v50  ;;  %v3111_v44 = vpack.i.bf16 %v2115_v61, %v1843_v40  ;;  %v1829_v26 = vmul.f32 %v1812_v10, %v1765_v6 }
 0x412   : > { %v2116_v1 = vadd.f32 %v2100_v2, %v2052_v63  ;;  %3112 = vxpose.xlu0.b32.cont [13/16] %v3111_v44, 128  ;;  %v1845_v31 = vadd.f32 %v1829_v26, %v1781_v5 }
 0x413   : > { %v2084_v39 = vpop.permute.xlu1 %2083  ;;  %v1814_v56 = vpop.permute.xlu0 %1813 }
 0x414   : > { %v2101_v9 = vmul.f32 %v2084_v39, %v1765_v6  ;;  %v3113_v15 = vpack.i.bf16 %v2116_v1, %v1844_v60  ;;  %v1830_v48 = vmul.f32 %v1814_v56, %v1766_v20 }
 0x416   : > { %v2117_v38 = vadd.f32 %v2101_v9, %v2053_v11  ;;  %3114 = vxpose.xlu0.b32.cont [14/16] %v3113_v15, 128  ;;  %v1846_v14 = vadd.f32 %v1830_v48, %v1782_v59 }
 0x417   : > { %v2086_v46 = vpop.permute.xlu1 %2085 }
 0x418   : > { %v2102_v12 = vmul.f32 %v2086_v46, %v1766_v20  ;;  %v3115_v51 = vpack.i.bf16 %v2117_v38, %v1845_v31 }
 0x41a   : > { %v2118_v8 = vadd.f32 %v2102_v12, %v2054_v25  ;;  %3116 = vxpose.xlu0.b32.cont [15/16] %v3115_v51, 128 }
 0x41c   : > { %v3117_v45 = vpack.i.bf16 %v2118_v8, %v1846_v14 }
 0x41e   : > { %3118 = vxpose.xlu0.b32.end [16/16] %v3117_v45, 128 }
 0x41f   : > { %3514 = shalt.err (!%p3511_p4)
}
 0x420   : > { %s3515_s5 = scalar_lea.hbm %s4825_s12, 2048  ;;  %s3519_s11 = scalar_lea.hbm %s4980_s27, 4096 }
 0x421   : > { %p3516_p13 = scmp.ne.s32.totalorder %s4825_s12, %s3515_s5  ;;  %p3520_p1 = scmp.lt.u32.totalorder %s4825_s12, %s4980_s27 }
 0x422   : > { %p3521_p11 = scmp.lt.u32.totalorder %s3519_s11, %s3515_s5  ;;  %p3523_p6 = scmp.lt.u32.totalorder %s3515_s5, %s4825_s12 }
 0x423   : > { %p3517_p2 = pnand %p3516_p13, %p3877_p5 }
 0x424   : > { %p3522_p8 = por %p3521_p11, %p3520_p1 }
 0x425   : > { %p3518_p12 = pneg %p3517_p2 }
 0x426   : > { %p3524_p10 = por %p3523_p6, %p3522_p8 }
 0x428   : > { %p3525_p3 = pnand %p3524_p10, %p3518_p12 }
 0x42a   : > { %3528 = shalt.err (!%p3525_p3)
}
 0x42b   : > { %s3636_s29 = smov 4   ;;  %s4859_s10 = scalar_lea.vmem [#allocation11], %s2543_s30 }
 0x42c   : > { %2992 = dma.vmem_to_hbm [thread:$0]  (%p3877_p5), %s4828_s20, 2048, %s4825_s12, %s2319_s26, %s3634_s21, %s3634_s21, %s3636_s29  }
 0x42d   : > { %s2333_s30 = sshll.u32 %s4859_s10, 4  ;;  %s4981_s26 = sld [smem:[#allocation24_spill]]  ;;  %s4883_s30 = int_to_ptr.vmem [resolvable:$true] %s2333_s30 }
 0x42e   : > { %s2314_s5 = scalar_lea.sflag [#allocation4], %s3932_s28  ;;  %s3529_s19 = scalar_lea.vmem %s4883_s30, 2048 }
 0x42f   : > { %p3530_p7 = scmp.ne.s32.totalorder %s4883_s30, %s3529_s19  ;;  %s3637_s25 = smov [#allocation11]  }
 0x430   : > { %s3533_s16 = sshll.u32 %s3637_s25, 4  ;;  %s3534_s16 = int_to_ptr.vmem [resolvable:$false] %s3533_s16 }
 0x431   : > { %p3531_p9 = pnand %p3530_p7, %p3877_p5  ;;  %s3535_s11 = scalar_lea.vmem %s3534_s16, 4096 }
 0x432   : > { %p3536_p4 = scmp.lt.s32.totalorder %s4883_s30, %s3534_s16  ;;  %p3537_p13 = scmp.lt.s32.totalorder %s3535_s11, %s3529_s19 }
 0x433   : > { %s4881_s24 = scalar_lea.hbm %s4981_s26, %s2781_s23  ;;  %p3532_p0 = pneg %p3531_p9 }
 0x434   : > { %p3538_p2 = por %p3537_p13, %p3536_p4 }
 0x436   : > { %p3539_p12 = pnand %p3538_p2, %p3532_p0 }
 0x462   : > { %v3119_v3 = vpop.trf.xlu0 }
 0x463   : > { %v3123_v24 = vunpack.i.h.bf16 %v3119_v3  ;;  %v3120_v53 = vunpack.i.l.bf16 %v3119_v3 }
 0x466   : > { %v3124_v37 = vpop.trf.xlu0 }
 0x467   : > { %v3128_v29 = vunpack.i.h.bf16 %v3124_v37  ;;  %v3125_v28 = vunpack.i.l.bf16 %v3124_v37 }
 0x469   : > { %v2786_v7 = vpack.c.bf16 %v3125_v28, %v3120_v53  ;;  %v2866_v18 = vpack.c.bf16 %v3128_v29, %v3123_v24 }
 0x46a   : > { %v3129_v42 = vpop.trf.xlu0 }
 0x46b   : > { %2787 = vst [vmem:[%s4859_s10] sm:$0xff] %v2786_v7   ;;  %2957 = vst [vmem:[%s4859_s10 + $0x40] sm:$0xff] %v2866_v18   ;;  %v3133_v54 = vunpack.i.h.bf16 %v3129_v42  ;;  %v3130_v4 = vunpack.i.l.bf16 %v3129_v42 }
 0x46e   : > { %v3134_v32 = vpop.trf.xlu0 }
 0x46f   : > { %v3138_v19 = vunpack.i.h.bf16 %v3134_v32  ;;  %v3135_v30 = vunpack.i.l.bf16 %v3134_v32 }
 0x471   : > { %v2791_v33 = vpack.c.bf16 %v3135_v30, %v3130_v4  ;;  %v2871_v43 = vpack.c.bf16 %v3138_v19, %v3133_v54 }
 0x472   : > { %v3139_v23 = vpop.trf.xlu0 }
 0x473   : > { %2943 = vst [vmem:[%s4859_s10 + $0x8] sm:$0xff] %v2791_v33   ;;  %2958 = vst [vmem:[%s4859_s10 + $0x48] sm:$0xff] %v2871_v43   ;;  %v3143_v0 = vunpack.i.h.bf16 %v3139_v23  ;;  %v3140_v55 = vunpack.i.l.bf16 %v3139_v23 }
 0x476   : > { %v3144_v13 = vpop.trf.xlu0 }
 0x477   : > { %v3148_v17 = vunpack.i.h.bf16 %v3144_v13  ;;  %v3145_v36 = vunpack.i.l.bf16 %v3144_v13 }
 0x479   : > { %v2796_v41 = vpack.c.bf16 %v3145_v36, %v3140_v55  ;;  %v2876_v21 = vpack.c.bf16 %v3148_v17, %v3143_v0 }
 0x47a   : > { %v3149_v50 = vpop.trf.xlu0 }
 0x47b   : > { %2944 = vst [vmem:[%s4859_s10 + $0x10] sm:$0xff] %v2796_v41   ;;  %2959 = vst [vmem:[%s4859_s10 + $0x50] sm:$0xff] %v2876_v21   ;;  %v3153_v52 = vunpack.i.h.bf16 %v3149_v50  ;;  %v3150_v57 = vunpack.i.l.bf16 %v3149_v50 }
 0x47e   : > { %v3154_v34 = vpop.trf.xlu0 }
 0x47f   : > { %v3158_v49 = vunpack.i.h.bf16 %v3154_v34  ;;  %v3155_v16 = vunpack.i.l.bf16 %v3154_v34 }
 0x481   : > { %v2801_v35 = vpack.c.bf16 %v3155_v16, %v3150_v57  ;;  %v2881_v40 = vpack.c.bf16 %v3158_v49, %v3153_v52 }
 0x482   : > { %v3159_v61 = vpop.trf.xlu0 }
 0x483   : > { %2945 = vst [vmem:[%s4859_s10 + $0x18] sm:$0xff] %v2801_v35   ;;  %2960 = vst [vmem:[%s4859_s10 + $0x58] sm:$0xff] %v2881_v40   ;;  %v3163_v27 = vunpack.i.h.bf16 %v3159_v61  ;;  %v3160_v22 = vunpack.i.l.bf16 %v3159_v61 }
 0x486   : > { %v3164_v6 = vpop.trf.xlu0 }
 0x487   : > { %v3168_v10 = vunpack.i.h.bf16 %v3164_v6  ;;  %v3165_v58 = vunpack.i.l.bf16 %v3164_v6 }
 0x489   : > { %v2806_v63 = vpack.c.bf16 %v3165_v58, %v3160_v22  ;;  %v2886_v2 = vpack.c.bf16 %v3168_v10, %v3163_v27 }
 0x48a   : > { %v3169_v44 = vpop.trf.xlu0 }
 0x48b   : > { %2946 = vst [vmem:[%s4859_s10 + $0x20] sm:$0xff] %v2806_v63   ;;  %2961 = vst [vmem:[%s4859_s10 + $0x60] sm:$0xff] %v2886_v2   ;;  %v3173_v47 = vunpack.i.h.bf16 %v3169_v44  ;;  %v3170_v60 = vunpack.i.l.bf16 %v3169_v44 }
 0x48e   : > { %v3174_v1 = vpop.trf.xlu0 }
 0x48f   : > { %v3178_v26 = vunpack.i.h.bf16 %v3174_v1  ;;  %v3175_v39 = vunpack.i.l.bf16 %v3174_v1 }
 0x491   : > { %v2811_v20 = vpack.c.bf16 %v3175_v39, %v3170_v60  ;;  %v2891_v56 = vpack.c.bf16 %v3178_v26, %v3173_v47 }
 0x492   : > { %v3179_v5 = vpop.trf.xlu0 }
 0x493   : > { %2947 = vst [vmem:[%s4859_s10 + $0x28] sm:$0xff] %v2811_v20   ;;  %2962 = vst [vmem:[%s4859_s10 + $0x68] sm:$0xff] %v2891_v56   ;;  %v3183_v11 = vunpack.i.h.bf16 %v3179_v5  ;;  %v3180_v9 = vunpack.i.l.bf16 %v3179_v5 }
 0x496   : > { %v3184_v15 = vpop.trf.xlu0 }
 0x497   : > { %v3188_v62 = vunpack.i.h.bf16 %v3184_v15  ;;  %v3185_v31 = vunpack.i.l.bf16 %v3184_v15 }
 0x499   : > { %v2816_v38 = vpack.c.bf16 %v3185_v31, %v3180_v9  ;;  %v2896_v48 = vpack.c.bf16 %v3188_v62, %v3183_v11 }
 0x49a   : > { %v3189_v46 = vpop.trf.xlu0 }
 0x49b   : > { %2948 = vst [vmem:[%s4859_s10 + $0x30] sm:$0xff] %v2816_v38   ;;  %2963 = vst [vmem:[%s4859_s10 + $0x70] sm:$0xff] %v2896_v48   ;;  %v3193_v59 = vunpack.i.h.bf16 %v3189_v46  ;;  %v3190_v25 = vunpack.i.l.bf16 %v3189_v46 }
 0x49e   : > { %v3194_v12 = vpop.trf.xlu0 }
 0x49f   : > { %v3198_v51 = vunpack.i.h.bf16 %v3194_v12  ;;  %v3195_v14 = vunpack.i.l.bf16 %v3194_v12 }
 0x4a1   : > { %v2821_v8 = vpack.c.bf16 %v3195_v14, %v3190_v25  ;;  %v2901_v45 = vpack.c.bf16 %v3198_v51, %v3193_v59 }
 0x4a3   : > { %2949 = vst [vmem:[%s4859_s10 + $0x38] sm:$0xff] %v2821_v8   ;;  %2964 = vst [vmem:[%s4859_s10 + $0x78] sm:$0xff] %v2901_v45  }
 0x4a4   : > { %3542 = shalt.err (!%p3539_p12)
}
 0x4a5   : > { %s3543_s23 = scalar_lea.hbm %s4881_s24, 2048  ;;  %s3547_s10 = scalar_lea.hbm %s4981_s26, 4096 }
 0x4a6   : > { %p3544_p1 = scmp.ne.s32.totalorder %s4881_s24, %s3543_s23  ;;  %p3548_p6 = scmp.lt.u32.totalorder %s4881_s24, %s4981_s26 }
 0x4a7   : > { %p3549_p10 = scmp.lt.u32.totalorder %s3547_s10, %s3543_s23  ;;  %p3551_p7 = scmp.lt.u32.totalorder %s3543_s23, %s4881_s24 }
 0x4a8   : > { %p3545_p11 = pnand %p3544_p1, %p3877_p5 }
 0x4a9   : > { %p3550_p3 = por %p3549_p10, %p3548_p6 }
 0x4aa   : > { %p3546_p8 = pneg %p3545_p11 }
 0x4ab   : > { %p3552_p9 = por %p3551_p7, %p3550_p3 }
 0x4ad   : > { %p3553_p0 = pnand %p3552_p9, %p3546_p8 }
 0x4af   : > { %3556 = shalt.err (!%p3553_p0)
}
 0x4b0   : > { %2991 = dma.vmem_to_hbm [thread:$0]  (%p3877_p5), %s4883_s30, 2048, %s4881_s24, %s2314_s5, %s3634_s21, %s3634_s21, %s3636_s29  }
 0x4b1 PF: > { %s4982_s19 = sld [smem:[#allocation19_spill]]  ;;  %s4983_s25 = sld [smem:[#allocation20_spill]] }
 0x4b2   : > { %p4985_p13 = scmp.ge.s32.totalorder %s3623_s18, 2 }
 0x4b7   : > { %s2366_s16 = sand.u32 1, %s4982_s19   ;;  %p4984_p4 = scmp.ne.s32.totalorder %s4983_s25, 0 }
 0x4b8   : > { %s2367_s11 = scalar_lea.sflag [#allocation4], %s2366_s16 }
 0x4b9   : > { %p3013_p2 = pnand %p4985_p13, %p4984_p4 }
 0x4bb   : > { %3594 = dma.done.wait (!%p3013_p2), %s2367_s11, 2048  }
 0x4bc   : > { %3596 = vsyncadd (!%p3013_p2), %s2367_s11, 4294965248  ;;  %s2376_s7 = scalar_lea.sflag [#allocation13], %s2366_s16 }
 0x4bd   : > { %3598 = dma.done.wait (!%p3013_p2), %s2376_s7, 2048  }
 0x4be   : > { %3600 = vsyncadd (!%p3013_p2), %s2376_s7, 4294965248  ;;  %s32_s18 = sadd.s32 1, %s3623_s18   ;;  %s4986_s13 = smov %s3607_s14 }
 0x4bf   : > { %p29_p12 = scmp.ge.s32.totalorder %s32_s18, 4   ;;  %s4987_s14 = smov %s3611_s15 }
 0x4c0   : > { %s4988_s15 = smov %s3886_s8  ;;  %s4989_s16 = smov %s3619_s17 }
 0x4c1   : > { %s4990_s17 = smov %s4992_s9  ;;  %31 = sbr.rel (!%p29_p12) target bundleno = 16 (0x10), region = 141 }
 0x4c8   :  { %2381 = vsyncpa [#allocation3], 1 }
 0x4c9   :  { %2383 = vsyncpa [#allocation3 + $0x1], 1 }
 0x4ca   :  { %2384 = vsyncpa [#allocation6], 1 }
 0x4cb   :  { %2385 = vsyncpa [#allocation9], 1 }
 0x4cc   :  { %2386 = vsyncpa [#allocation4], 1 }
 0x4cd   :  { %2388 = vsyncpa [#allocation4 + $0x1], 1 }
 0x4ce   :  { %2389 = vsyncpa [#allocation13], 1 }
 0x4cf   :  { %2391 = vsyncpa [#allocation13 + $0x1], 1 }

</bundles_post_ra>
